<compile_context>
chip_gen: v5e
topology: v5e:2x2
jax: 0.10.0
libtpu: 0.0.40
codegen_flags: <defaults>
</compile_context>

<pallas_src>
import functools
import math

import jax
import jax.numpy as jnp
from jax.experimental import pallas as pl
from jax.experimental.pallas import tpu as pltpu


def _upsample_conv_kernel(x_ref, w_ref, b_ref, o_ref):
    """Fused nearest-2x (rows) + collapsed 3x3 conv for one row tile.

    x_ref: (1, 1, TH+2, 2W+2, Cin)  column-upsampled, zero-padded tile (2-row halo)
    w_ref: (2, 2, 3, Cin, Cp)       collapsed weights [row_phase, row_tap, col_tap, ci, co]
    b_ref: (1, Cp)                  bias, Cout padded to Cp (lane-dense)
    o_ref: (1, TH, 2, 2W, Cp)       output rows, row-phase on dim 2
    """
    TH = o_ref.shape[1]
    WW = o_ref.shape[3]              # = 2*W (already upsampled along columns)
    Cp = o_ref.shape[4]
    Cin = x_ref.shape[4]

    bias = b_ref[...]                # (1, Cp); broadcasts over (TH, WW, Cp)

    for a in range(2):               # output row phase (even / odd output rows)
        acc = jnp.zeros((TH * WW, Cp), jnp.float32)
        for r in range(2):           # collapsed row tap
            for dw in range(3):      # column tap
                win = x_ref[0, 0, a + r:a + r + TH, dw:dw + WW, :]   # (TH, WW, Cin)
                acc = acc + jnp.dot(
                    win.reshape(TH * WW, Cin),                       # free reshape
                    w_ref[a, r, dw],                                 # (Cin, Cp)
                    preferred_element_type=jnp.float32,
                )
        out_a = acc.reshape(TH, WW, Cp) + bias
        o_ref[0, :, a, :, :] = out_a.astype(o_ref.dtype)


def upsample_forward(x_nchw, weight_oihw=None, bias=None, *, with_conv=True,
                     row_tile=8):
    """Equivalent of Upsample.forward.  x_nchw: (N, C, H, W) -> (N, C, 2H, 2W)."""
    N, C, H, W = x_nchw.shape
    x_nhwc = jnp.transpose(x_nchw, (0, 2, 3, 1))                     # NHWC

    if not with_conv:
        up = jnp.repeat(jnp.repeat(x_nhwc, 2, axis=1), 2, axis=2)
        return jnp.transpose(up, (0, 3, 1, 2))

    # ---- layout prep (plain XLA glue, original-resolution rows) ----------
    ycol = jnp.repeat(x_nhwc, 2, axis=2)                             # (N, H, 2W, C)
    ypad = jnp.pad(ycol, ((0, 0), (1, 1), (1, 1), (0, 0)))           # (N, H+2, 2W+2, C)

    TH = row_tile if (H % row_tile == 0 and H >= row_tile) else H
    T = H // TH
    # Row tiles with 2-row halo -> plain Blocked BlockSpecs, no Element indexing.
    xt = jnp.stack([ypad[:, t * TH:t * TH + TH + 2] for t in range(T)], axis=1)
    # xt: (N, T, TH+2, 2W+2, C)

    # Collapsed row weights (sub-pixel conv identity):
    #   even output rows (a=0): taps {row-1: w[0],        row:   w[1]+w[2]}
    #   odd  output rows (a=1): taps {row:   w[0]+w[1],   row+1: w[2]}
    w_hwio = jnp.transpose(weight_oihw, (2, 3, 1, 0))                # (3, 3, Cin, Cout)
    w_rows = jnp.stack(
        [jnp.stack([w_hwio[0], w_hwio[1] + w_hwio[2]], axis=0),
         jnp.stack([w_hwio[0] + w_hwio[1], w_hwio[2]], axis=0)],
        axis=0)                                                      # (2, 2, 3, Cin, Cout)

    # Lane-dense output: pad Cout to a multiple of 128 (no-op for real C>=128).
    Cp = ((C + 127) // 128) * 128
    w_p = jnp.pad(w_rows, ((0, 0), (0, 0), (0, 0), (0, 0), (0, Cp - C)))
    b_p = jnp.pad(bias, (0, Cp - C)).reshape(1, Cp)

    flops = int(2 * 12 * N * H * (2 * W) * C * Cp)
    bytes_accessed = int(4 * (N * T * (TH + 2) * (2 * W + 2) * C        # input tiles
                              + 12 * C * Cp + Cp                        # weights + bias
                              + N * H * 2 * 2 * W * Cp))                # output

    out5 = pl.pallas_call(
        _upsample_conv_kernel,
        out_shape=jax.ShapeDtypeStruct((N, H, 2, 2 * W, Cp), x_nchw.dtype),
        grid_spec=pltpu.PrefetchScalarGridSpec(
            num_scalar_prefetch=0,
            grid=(N, T),
            in_specs=[
                pl.BlockSpec((1, 1, TH + 2, 2 * W + 2, C),
                             lambda n, t: (n, t, 0, 0, 0)),
                pl.BlockSpec((2, 2, 3, C, Cp), lambda n, t: (0, 0, 0, 0, 0)),
                pl.BlockSpec((1, Cp), lambda n, t: (0, 0)),
            ],
            out_specs=pl.BlockSpec((1, TH, 2, 2 * W, Cp),
                                   lambda n, t: (n, t, 0, 0, 0)),
        ),
        compiler_params=pltpu.CompilerParams(
            dimension_semantics=("parallel", "parallel")),
        cost_estimate=pl.CostEstimate(
            flops=flops, transcendentals=0, bytes_accessed=bytes_accessed),
    )(xt, w_p, b_p)

    out = out5[..., :C].reshape(N, 2 * H, 2 * W, C)                  # free interleave
    return jnp.transpose(out, (0, 3, 1, 2))                          # back to NCHW


if __name__ == "__main__":
    N, C, H, W = 2, 4, 16, 16

    key = jax.random.PRNGKey(0)
    kx, kw, kb = jax.random.split(key, 3)

    x = jax.random.normal(kx, (N, C, H, W), jnp.float32)

    # Deterministic Conv2d(C, C, 3, 1, 1) parameters (PyTorch-style uniform init).
    fan_in = C * 3 * 3
    bound = 1.0 / math.sqrt(fan_in)
    weight = jax.random.uniform(kw, (C, C, 3, 3), jnp.float32, -bound, bound)  # OIHW
    bias = jax.random.uniform(kb, (C,), jnp.float32, -bound, bound)

    fwd = jax.jit(functools.partial(upsample_forward, with_conv=True))
    out = jax.block_until_ready(fwd(x, weight, bias))
    assert out.shape == (N, C, 2 * H, 2 * W), out.shape

    # Reference: XLA conv on the nearest-2x upsampled input.
    x_up = jnp.repeat(jnp.repeat(x, 2, axis=2), 2, axis=3)
    ref = jax.lax.conv_general_dilated(
        x_up, weight, window_strides=(1, 1), padding=((1, 1), (1, 1)),
        dimension_numbers=("NCHW", "OIHW", "NCHW"),
    ) + bias[None, :, None, None]
    err = float(jnp.max(jnp.abs(out - ref)))
    # Tolerance covers possible f32 MXU pass-precision differences between the
    # reference conv and the in-kernel matmuls; structural bugs are O(1e-1).
    assert err < 1e-2, err

    print("KERNEL_OK")
</pallas_src>

<mosaic_0001>
module attributes {stable_mosaic.version = 11 : i64} {
  func.func @_upsample_conv_kernel(%arg0: i32, %arg1: i32, %arg2: memref<1x1x10x34x4xf32, #tpu.memory_space<vmem>>, %arg3: memref<2x2x3x4x128xf32, #tpu.memory_space<vmem>>, %arg4: memref<1x128xf32, #tpu.memory_space<vmem>>, %arg5: memref<1x8x2x32x128xf32, #tpu.memory_space<vmem>>) attributes {dimension_semantics = [#tpu.dimension_semantics<parallel>, #tpu.dimension_semantics<parallel>], iteration_bounds = array<i64: 2, 2>, scalar_prefetch = 0 : i64, scratch_operands = 0 : i64, tpu.core_type = #tpu.core_type<tc>, window_params = [{transform_indices = @transform_0, window_bounds = array<i64: 1, 1, 10, 34, 4>}, {pipeline_mode = #tpu.pipeline_mode<synchronous>, transform_indices = @transform_1, window_bounds = array<i64: 2, 2, 3, 4, 128>}, {pipeline_mode = #tpu.pipeline_mode<synchronous>, transform_indices = @transform_2, window_bounds = array<i64: 1, 128>}, {transform_indices = @transform_3, window_bounds = array<i64: 1, 8, 2, 32, 128>}]} {
    %c0 = arith.constant 0 : index
    %c0_0 = arith.constant 0 : index
    %0 = vector.load %arg4[%c0, %c0_0] : memref<1x128xf32, #tpu.memory_space<vmem>>, vector<1x128xf32>
    %cst = arith.constant 0.000000e+00 : f32
    %1 = vector.broadcast %cst : f32 to vector<256x128xf32>
    %c0_1 = arith.constant 0 : index
    %c0_2 = arith.constant 0 : index
    %c0_3 = arith.constant 0 : index
    %c0_4 = arith.constant 0 : index
    %c0_5 = arith.constant 0 : index
    %2 = vector.load %arg2[%c0_1, %c0_2, %c0_3, %c0_4, %c0_5] : memref<1x1x10x34x4xf32, #tpu.memory_space<vmem>>, vector<1x1x8x32x4xf32>
    %3 = vector.shape_cast %2 : vector<1x1x8x32x4xf32> to vector<8x32x4xf32>
    %4 = vector.shape_cast %3 : vector<8x32x4xf32> to vector<256x4xf32>
    %c0_6 = arith.constant 0 : index
    %c0_7 = arith.constant 0 : index
    %c0_8 = arith.constant 0 : index
    %c0_9 = arith.constant 0 : index
    %c0_10 = arith.constant 0 : index
    %5 = vector.load %arg3[%c0_6, %c0_7, %c0_8, %c0_9, %c0_10] : memref<2x2x3x4x128xf32, #tpu.memory_space<vmem>>, vector<1x1x1x4x128xf32>
    %6 = vector.shape_cast %5 : vector<1x1x1x4x128xf32> to vector<4x128xf32>
    %cst_11 = arith.constant dense<0.000000e+00> : vector<256x128xf32>
    %7 = tpu.matmul %4, %6, %cst_11 {dimension_numbers = #tpu.dot_dimension_numbers<[1], [0], [0], [1], [0, 0, 1, 1], [], []>} : vector<256x4xf32>, vector<4x128xf32>, vector<256x128xf32> -> vector<256x128xf32>
    %8 = arith.addf %1, %7 : vector<256x128xf32>
    %c0_12 = arith.constant 0 : index
    %c0_13 = arith.constant 0 : index
    %c0_14 = arith.constant 0 : index
    %c1 = arith.constant 1 : index
    %c0_15 = arith.constant 0 : index
    %9 = vector.load %arg2[%c0_12, %c0_13, %c0_14, %c1, %c0_15] : memref<1x1x10x34x4xf32, #tpu.memory_space<vmem>>, vector<1x1x8x32x4xf32>
    %10 = vector.shape_cast %9 : vector<1x1x8x32x4xf32> to vector<8x32x4xf32>
    %11 = vector.shape_cast %10 : vector<8x32x4xf32> to vector<256x4xf32>
    %c0_16 = arith.constant 0 : index
    %c0_17 = arith.constant 0 : index
    %c1_18 = arith.constant 1 : index
    %c0_19 = arith.constant 0 : index
    %c0_20 = arith.constant 0 : index
    %12 = vector.load %arg3[%c0_16, %c0_17, %c1_18, %c0_19, %c0_20] : memref<2x2x3x4x128xf32, #tpu.memory_space<vmem>>, vector<1x1x1x4x128xf32>
    %13 = vector.shape_cast %12 : vector<1x1x1x4x128xf32> to vector<4x128xf32>
    %cst_21 = arith.constant dense<0.000000e+00> : vector<256x128xf32>
    %14 = tpu.matmul %11, %13, %cst_21 {dimension_numbers = #tpu.dot_dimension_numbers<[1], [0], [0], [1], [0, 0, 1, 1], [], []>} : vector<256x4xf32>, vector<4x128xf32>, vector<256x128xf32> -> vector<256x128xf32>
    %15 = arith.addf %8, %14 : vector<256x128xf32>
    %c0_22 = arith.constant 0 : index
    %c0_23 = arith.constant 0 : index
    %c0_24 = arith.constant 0 : index
    %c2 = arith.constant 2 : index
    %c0_25 = arith.constant 0 : index
    %16 = vector.load %arg2[%c0_22, %c0_23, %c0_24, %c2, %c0_25] : memref<1x1x10x34x4xf32, #tpu.memory_space<vmem>>, vector<1x1x8x32x4xf32>
    %17 = vector.shape_cast %16 : vector<1x1x8x32x4xf32> to vector<8x32x4xf32>
    %18 = vector.shape_cast %17 : vector<8x32x4xf32> to vector<256x4xf32>
    %c0_26 = arith.constant 0 : index
    %c0_27 = arith.constant 0 : index
    %c2_28 = arith.constant 2 : index
    %c0_29 = arith.constant 0 : index
    %c0_30 = arith.constant 0 : index
    %19 = vector.load %arg3[%c0_26, %c0_27, %c2_28, %c0_29, %c0_30] : memref<2x2x3x4x128xf32, #tpu.memory_space<vmem>>, vector<1x1x1x4x128xf32>
    %20 = vector.shape_cast %19 : vector<1x1x1x4x128xf32> to vector<4x128xf32>
    %cst_31 = arith.constant dense<0.000000e+00> : vector<256x128xf32>
    %21 = tpu.matmul %18, %20, %cst_31 {dimension_numbers = #tpu.dot_dimension_numbers<[1], [0], [0], [1], [0, 0, 1, 1], [], []>} : vector<256x4xf32>, vector<4x128xf32>, vector<256x128xf32> -> vector<256x128xf32>
    %22 = arith.addf %15, %21 : vector<256x128xf32>
    %c0_32 = arith.constant 0 : index
    %c0_33 = arith.constant 0 : index
    %c1_34 = arith.constant 1 : index
    %c0_35 = arith.constant 0 : index
    %c0_36 = arith.constant 0 : index
    %23 = vector.load %arg2[%c0_32, %c0_33, %c1_34, %c0_35, %c0_36] : memref<1x1x10x34x4xf32, #tpu.memory_space<vmem>>, vector<1x1x8x32x4xf32>
    %24 = vector.shape_cast %23 : vector<1x1x8x32x4xf32> to vector<8x32x4xf32>
    %25 = vector.shape_cast %24 : vector<8x32x4xf32> to vector<256x4xf32>
    %c0_37 = arith.constant 0 : index
    %c1_38 = arith.constant 1 : index
    %c0_39 = arith.constant 0 : index
    %c0_40 = arith.constant 0 : index
    %c0_41 = arith.constant 0 : index
    %26 = vector.load %arg3[%c0_37, %c1_38, %c0_39, %c0_40, %c0_41] : memref<2x2x3x4x128xf32, #tpu.memory_space<vmem>>, vector<1x1x1x4x128xf32>
    %27 = vector.shape_cast %26 : vector<1x1x1x4x128xf32> to vector<4x128xf32>
    %cst_42 = arith.constant dense<0.000000e+00> : vector<256x128xf32>
    %28 = tpu.matmul %25, %27, %cst_42 {dimension_numbers = #tpu.dot_dimension_numbers<[1], [0], [0], [1], [0, 0, 1, 1], [], []>} : vector<256x4xf32>, vector<4x128xf32>, vector<256x128xf32> -> vector<256x128xf32>
    %29 = arith.addf %22, %28 : vector<256x128xf32>
    %c0_43 = arith.constant 0 : index
    %c0_44 = arith.constant 0 : index
    %c1_45 = arith.constant 1 : index
    %c1_46 = arith.constant 1 : index
    %c0_47 = arith.constant 0 : index
    %30 = vector.load %arg2[%c0_43, %c0_44, %c1_45, %c1_46, %c0_47] : memref<1x1x10x34x4xf32, #tpu.memory_space<vmem>>, vector<1x1x8x32x4xf32>
    %31 = vector.shape_cast %30 : vector<1x1x8x32x4xf32> to vector<8x32x4xf32>
    %32 = vector.shape_cast %31 : vector<8x32x4xf32> to vector<256x4xf32>
    %c0_48 = arith.constant 0 : index
    %c1_49 = arith.constant 1 : index
    %c1_50 = arith.constant 1 : index
    %c0_51 = arith.constant 0 : index
    %c0_52 = arith.constant 0 : index
    %33 = vector.load %arg3[%c0_48, %c1_49, %c1_50, %c0_51, %c0_52] : memref<2x2x3x4x128xf32, #tpu.memory_space<vmem>>, vector<1x1x1x4x128xf32>
    %34 = vector.shape_cast %33 : vector<1x1x1x4x128xf32> to vector<4x128xf32>
    %cst_53 = arith.constant dense<0.000000e+00> : vector<256x128xf32>
    %35 = tpu.matmul %32, %34, %cst_53 {dimension_numbers = #tpu.dot_dimension_numbers<[1], [0], [0], [1], [0, 0, 1, 1], [], []>} : vector<256x4xf32>, vector<4x128xf32>, vector<256x128xf32> -> vector<256x128xf32>
    %36 = arith.addf %29, %35 : vector<256x128xf32>
    %c0_54 = arith.constant 0 : index
    %c0_55 = arith.constant 0 : index
    %c1_56 = arith.constant 1 : index
    %c2_57 = arith.constant 2 : index
    %c0_58 = arith.constant 0 : index
    %37 = vector.load %arg2[%c0_54, %c0_55, %c1_56, %c2_57, %c0_58] : memref<1x1x10x34x4xf32, #tpu.memory_space<vmem>>, vector<1x1x8x32x4xf32>
    %38 = vector.shape_cast %37 : vector<1x1x8x32x4xf32> to vector<8x32x4xf32>
    %39 = vector.shape_cast %38 : vector<8x32x4xf32> to vector<256x4xf32>
    %c0_59 = arith.constant 0 : index
    %c1_60 = arith.constant 1 : index
    %c2_61 = arith.constant 2 : index
    %c0_62 = arith.constant 0 : index
    %c0_63 = arith.constant 0 : index
    %40 = vector.load %arg3[%c0_59, %c1_60, %c2_61, %c0_62, %c0_63] : memref<2x2x3x4x128xf32, #tpu.memory_space<vmem>>, vector<1x1x1x4x128xf32>
    %41 = vector.shape_cast %40 : vector<1x1x1x4x128xf32> to vector<4x128xf32>
    %cst_64 = arith.constant dense<0.000000e+00> : vector<256x128xf32>
    %42 = tpu.matmul %39, %41, %cst_64 {dimension_numbers = #tpu.dot_dimension_numbers<[1], [0], [0], [1], [0, 0, 1, 1], [], []>} : vector<256x4xf32>, vector<4x128xf32>, vector<256x128xf32> -> vector<256x128xf32>
    %43 = arith.addf %36, %42 : vector<256x128xf32>
    %44 = vector.shape_cast %43 : vector<256x128xf32> to vector<8x32x128xf32>
    %45 = vector.shape_cast %0 : vector<1x128xf32> to vector<1x1x128xf32>
    %46 = vector.broadcast %45 : vector<1x1x128xf32> to vector<8x32x128xf32>
    %47 = arith.addf %44, %46 : vector<8x32x128xf32>
    %c0_65 = arith.constant 0 : index
    %c0_66 = arith.constant 0 : index
    %c0_67 = arith.constant 0 : index
    %c0_68 = arith.constant 0 : index
    %c0_69 = arith.constant 0 : index
    %48 = vector.load %arg5[%c0_65, %c0_66, %c0_67, %c0_68, %c0_69] : memref<1x8x2x32x128xf32, #tpu.memory_space<vmem>>, vector<1x8x1x32x128xf32>
    %49 = vector.shape_cast %48 : vector<1x8x1x32x128xf32> to vector<8x32x128xf32>
    %50 = vector.shape_cast %47 : vector<8x32x128xf32> to vector<1x8x1x32x128xf32>
    tpu.vector_store %arg5[%c0_65, %c0_66, %c0_67, %c0_68, %c0_69], %50 {strides = array<i32>} : memref<1x8x2x32x128xf32, #tpu.memory_space<vmem>>, vector<1x8x1x32x128xf32>,
    %cst_70 = arith.constant 0.000000e+00 : f32
    %51 = vector.broadcast %cst_70 : f32 to vector<256x128xf32>
    %c0_71 = arith.constant 0 : index
    %c0_72 = arith.constant 0 : index
    %c1_73 = arith.constant 1 : index
    %c0_74 = arith.constant 0 : index
    %c0_75 = arith.constant 0 : index
    %52 = vector.load %arg2[%c0_71, %c0_72, %c1_73, %c0_74, %c0_75] : memref<1x1x10x34x4xf32, #tpu.memory_space<vmem>>, vector<1x1x8x32x4xf32>
    %53 = vector.shape_cast %52 : vector<1x1x8x32x4xf32> to vector<8x32x4xf32>
    %54 = vector.shape_cast %53 : vector<8x32x4xf32> to vector<256x4xf32>
    %c1_76 = arith.constant 1 : index
    %c0_77 = arith.constant 0 : index
    %c0_78 = arith.constant 0 : index
    %c0_79 = arith.constant 0 : index
    %c0_80 = arith.constant 0 : index
    %55 = vector.load %arg3[%c1_76, %c0_77, %c0_78, %c0_79, %c0_80] : memref<2x2x3x4x128xf32, #tpu.memory_space<vmem>>, vector<1x1x1x4x128xf32>
    %56 = vector.shape_cast %55 : vector<1x1x1x4x128xf32> to vector<4x128xf32>
    %cst_81 = arith.constant dense<0.000000e+00> : vector<256x128xf32>
    %57 = tpu.matmul %54, %56, %cst_81 {dimension_numbers = #tpu.dot_dimension_numbers<[1], [0], [0], [1], [0, 0, 1, 1], [], []>} : vector<256x4xf32>, vector<4x128xf32>, vector<256x128xf32> -> vector<256x128xf32>
    %58 = arith.addf %51, %57 : vector<256x128xf32>
    %c0_82 = arith.constant 0 : index
    %c0_83 = arith.constant 0 : index
    %c1_84 = arith.constant 1 : index
    %c1_85 = arith.constant 1 : index
    %c0_86 = arith.constant 0 : index
    %59 = vector.load %arg2[%c0_82, %c0_83, %c1_84, %c1_85, %c0_86] : memref<1x1x10x34x4xf32, #tpu.memory_space<vmem>>, vector<1x1x8x32x4xf32>
    %60 = vector.shape_cast %59 : vector<1x1x8x32x4xf32> to vector<8x32x4xf32>
    %61 = vector.shape_cast %60 : vector<8x32x4xf32> to vector<256x4xf32>
    %c1_87 = arith.constant 1 : index
    %c0_88 = arith.constant 0 : index
    %c1_89 = arith.constant 1 : index
    %c0_90 = arith.constant 0 : index
    %c0_91 = arith.constant 0 : index
    %62 = vector.load %arg3[%c1_87, %c0_88, %c1_89, %c0_90, %c0_91] : memref<2x2x3x4x128xf32, #tpu.memory_space<vmem>>, vector<1x1x1x4x128xf32>
    %63 = vector.shape_cast %62 : vector<1x1x1x4x128xf32> to vector<4x128xf32>
    %cst_92 = arith.constant dense<0.000000e+00> : vector<256x128xf32>
    %64 = tpu.matmul %61, %63, %cst_92 {dimension_numbers = #tpu.dot_dimension_numbers<[1], [0], [0], [1], [0, 0, 1, 1], [], []>} : vector<256x4xf32>, vector<4x128xf32>, vector<256x128xf32> -> vector<256x128xf32>
    %65 = arith.addf %58, %64 : vector<256x128xf32>
    %c0_93 = arith.constant 0 : index
    %c0_94 = arith.constant 0 : index
    %c1_95 = arith.constant 1 : index
    %c2_96 = arith.constant 2 : index
    %c0_97 = arith.constant 0 : index
    %66 = vector.load %arg2[%c0_93, %c0_94, %c1_95, %c2_96, %c0_97] : memref<1x1x10x34x4xf32, #tpu.memory_space<vmem>>, vector<1x1x8x32x4xf32>
    %67 = vector.shape_cast %66 : vector<1x1x8x32x4xf32> to vector<8x32x4xf32>
    %68 = vector.shape_cast %67 : vector<8x32x4xf32> to vector<256x4xf32>
    %c1_98 = arith.constant 1 : index
    %c0_99 = arith.constant 0 : index
    %c2_100 = arith.constant 2 : index
    %c0_101 = arith.constant 0 : index
    %c0_102 = arith.constant 0 : index
    %69 = vector.load %arg3[%c1_98, %c0_99, %c2_100, %c0_101, %c0_102] : memref<2x2x3x4x128xf32, #tpu.memory_space<vmem>>, vector<1x1x1x4x128xf32>
    %70 = vector.shape_cast %69 : vector<1x1x1x4x128xf32> to vector<4x128xf32>
    %cst_103 = arith.constant dense<0.000000e+00> : vector<256x128xf32>
    %71 = tpu.matmul %68, %70, %cst_103 {dimension_numbers = #tpu.dot_dimension_numbers<[1], [0], [0], [1], [0, 0, 1, 1], [], []>} : vector<256x4xf32>, vector<4x128xf32>, vector<256x128xf32> -> vector<256x128xf32>
    %72 = arith.addf %65, %71 : vector<256x128xf32>
    %c0_104 = arith.constant 0 : index
    %c0_105 = arith.constant 0 : index
    %c2_106 = arith.constant 2 : index
    %c0_107 = arith.constant 0 : index
    %c0_108 = arith.constant 0 : index
    %73 = vector.load %arg2[%c0_104, %c0_105, %c2_106, %c0_107, %c0_108] : memref<1x1x10x34x4xf32, #tpu.memory_space<vmem>>, vector<1x1x8x32x4xf32>
    %74 = vector.shape_cast %73 : vector<1x1x8x32x4xf32> to vector<8x32x4xf32>
    %75 = vector.shape_cast %74 : vector<8x32x4xf32> to vector<256x4xf32>
    %c1_109 = arith.constant 1 : index
    %c1_110 = arith.constant 1 : index
    %c0_111 = arith.constant 0 : index
    %c0_112 = arith.constant 0 : index
    %c0_113 = arith.constant 0 : index
    %76 = vector.load %arg3[%c1_109, %c1_110, %c0_111, %c0_112, %c0_113] : memref<2x2x3x4x128xf32, #tpu.memory_space<vmem>>, vector<1x1x1x4x128xf32>
    %77 = vector.shape_cast %76 : vector<1x1x1x4x128xf32> to vector<4x128xf32>
    %cst_114 = arith.constant dense<0.000000e+00> : vector<256x128xf32>
    %78 = tpu.matmul %75, %77, %cst_114 {dimension_numbers = #tpu.dot_dimension_numbers<[1], [0], [0], [1], [0, 0, 1, 1], [], []>} : vector<256x4xf32>, vector<4x128xf32>, vector<256x128xf32> -> vector<256x128xf32>
    %79 = arith.addf %72, %78 : vector<256x128xf32>
    %c0_115 = arith.constant 0 : index
    %c0_116 = arith.constant 0 : index
    %c2_117 = arith.constant 2 : index
    %c1_118 = arith.constant 1 : index
    %c0_119 = arith.constant 0 : index
    %80 = vector.load %arg2[%c0_115, %c0_116, %c2_117, %c1_118, %c0_119] : memref<1x1x10x34x4xf32, #tpu.memory_space<vmem>>, vector<1x1x8x32x4xf32>
    %81 = vector.shape_cast %80 : vector<1x1x8x32x4xf32> to vector<8x32x4xf32>
    %82 = vector.shape_cast %81 : vector<8x32x4xf32> to vector<256x4xf32>
    %c1_120 = arith.constant 1 : index
    %c1_121 = arith.constant 1 : index
    %c1_122 = arith.constant 1 : index
    %c0_123 = arith.constant 0 : index
    %c0_124 = arith.constant 0 : index
    %83 = vector.load %arg3[%c1_120, %c1_121, %c1_122, %c0_123, %c0_124] : memref<2x2x3x4x128xf32, #tpu.memory_space<vmem>>, vector<1x1x1x4x128xf32>
    %84 = vector.shape_cast %83 : vector<1x1x1x4x128xf32> to vector<4x128xf32>
    %cst_125 = arith.constant dense<0.000000e+00> : vector<256x128xf32>
    %85 = tpu.matmul %82, %84, %cst_125 {dimension_numbers = #tpu.dot_dimension_numbers<[1], [0], [0], [1], [0, 0, 1, 1], [], []>} : vector<256x4xf32>, vector<4x128xf32>, vector<256x128xf32> -> vector<256x128xf32>
    %86 = arith.addf %79, %85 : vector<256x128xf32>
    %c0_126 = arith.constant 0 : index
    %c0_127 = arith.constant 0 : index
    %c2_128 = arith.constant 2 : index
    %c2_129 = arith.constant 2 : index
    %c0_130 = arith.constant 0 : index
    %87 = vector.load %arg2[%c0_126, %c0_127, %c2_128, %c2_129, %c0_130] : memref<1x1x10x34x4xf32, #tpu.memory_space<vmem>>, vector<1x1x8x32x4xf32>
    %88 = vector.shape_cast %87 : vector<1x1x8x32x4xf32> to vector<8x32x4xf32>
    %89 = vector.shape_cast %88 : vector<8x32x4xf32> to vector<256x4xf32>
    %c1_131 = arith.constant 1 : index
    %c1_132 = arith.constant 1 : index
    %c2_133 = arith.constant 2 : index
    %c0_134 = arith.constant 0 : index
    %c0_135 = arith.constant 0 : index
    %90 = vector.load %arg3[%c1_131, %c1_132, %c2_133, %c0_134, %c0_135] : memref<2x2x3x4x128xf32, #tpu.memory_space<vmem>>, vector<1x1x1x4x128xf32>
    %91 = vector.shape_cast %90 : vector<1x1x1x4x128xf32> to vector<4x128xf32>
    %cst_136 = arith.constant dense<0.000000e+00> : vector<256x128xf32>
    %92 = tpu.matmul %89, %91, %cst_136 {dimension_numbers = #tpu.dot_dimension_numbers<[1], [0], [0], [1], [0, 0, 1, 1], [], []>} : vector<256x4xf32>, vector<4x128xf32>, vector<256x128xf32> -> vector<256x128xf32>
    %93 = arith.addf %86, %92 : vector<256x128xf32>
    %94 = vector.shape_cast %93 : vector<256x128xf32> to vector<8x32x128xf32>
    %95 = vector.shape_cast %0 : vector<1x128xf32> to vector<1x1x128xf32>
    %96 = vector.broadcast %95 : vector<1x1x128xf32> to vector<8x32x128xf32>
    %97 = arith.addf %94, %96 : vector<8x32x128xf32>
    %c0_137 = arith.constant 0 : index
    %c0_138 = arith.constant 0 : index
    %c1_139 = arith.constant 1 : index
    %c0_140 = arith.constant 0 : index
    %c0_141 = arith.constant 0 : index
    %98 = vector.load %arg5[%c0_137, %c0_138, %c1_139, %c0_140, %c0_141] : memref<1x8x2x32x128xf32, #tpu.memory_space<vmem>>, vector<1x8x1x32x128xf32>
    %99 = vector.shape_cast %98 : vector<1x8x1x32x128xf32> to vector<8x32x128xf32>
    %100 = vector.shape_cast %97 : vector<8x32x128xf32> to vector<1x8x1x32x128xf32>
    tpu.vector_store %arg5[%c0_137, %c0_138, %c1_139, %c0_140, %c0_141], %100 {strides = array<i32>} : memref<1x8x2x32x128xf32, #tpu.memory_space<vmem>>, vector<1x8x1x32x128xf32>,
    return
  }
  func.func @transform_0(%arg0: i32, %arg1: i32) -> (i32, i32, i32, i32, i32) {
    %c0_i32 = arith.constant 0 : i32
    %c0_i32_0 = arith.constant 0 : i32
    %c0_i32_1 = arith.constant 0 : i32
    %c0_i32_2 = arith.constant 0 : i32
    return %arg0, %arg1, %c0_i32, %c0_i32_0, %c0_i32_1 : i32, i32, i32, i32, i32
  }
  func.func @transform_1(%arg0: i32, %arg1: i32) -> (i32, i32, i32, i32, i32) {
    %c0_i32 = arith.constant 0 : i32
    %c0_i32_0 = arith.constant 0 : i32
    %c0_i32_1 = arith.constant 0 : i32
    %c0_i32_2 = arith.constant 0 : i32
    %c0_i32_3 = arith.constant 0 : i32
    %c0_i32_4 = arith.constant 0 : i32
    return %c0_i32, %c0_i32_0, %c0_i32_1, %c0_i32_2, %c0_i32_3 : i32, i32, i32, i32, i32
  }
  func.func @transform_2(%arg0: i32, %arg1: i32) -> (i32, i32) {
    %c0_i32 = arith.constant 0 : i32
    %c0_i32_0 = arith.constant 0 : i32
    %c0_i32_1 = arith.constant 0 : i32
    return %c0_i32, %c0_i32_0 : i32, i32
  }
  func.func @transform_3(%arg0: i32, %arg1: i32) -> (i32, i32, i32, i32, i32) {
    %c0_i32 = arith.constant 0 : i32
    %c0_i32_0 = arith.constant 0 : i32
    %c0_i32_1 = arith.constant 0 : i32
    %c0_i32_2 = arith.constant 0 : i32
    return %arg0, %arg1, %c0_i32, %c0_i32_0, %c0_i32_1 : i32, i32, i32, i32, i32
  }
}

</mosaic_0001>

<bundles_post_ra>
// kernel: upsample_forward.1
= control target key start
LH: loop header
LB: loop body
LE: loop exit
PB: predicated region body
PF: predicated region fallthrough
CT: control target
= control target key end

     0   :  { %s4496_s12 = smov 0   ;;  %s4498_s13 = smov 0   ;;  %s6060_s0 = inlined_call_operand.vmem [shape: f32[2,2,10,34,4], index: 0, kind: input, shape index: {}]   ;;  %s6061_s1 = inlined_call_operand.vmem [shape: f32[2,2,3,4,128], index: 1, kind: input, shape index: {}]   ;;  %s6062_s2 = inlined_call_operand.vmem [shape: f32[1,128], index: 2, kind: input, shape index: {}]   ;;  %s6063_s3 = inlined_call_operand.vmem [shape: f32[2,16,2,32,128], index: 3, kind: output, shape index: {}]  }
   0x1   :  { %s4500_s14 = smov 0   ;;  %s4502_s15 = smov 0  }
   0x2   :  { %s4504_s16 = smov 0  }
   0x3 LB: > { %s22_s17 = sadd.s32 1, %s4466_s14  ;;  %s25_s18 = sadd.s32 1, %s4470_s15  ;;  %s4474_s16 = sphi %s4504_s16, %s13_s16   ;;  %s4470_s15 = sphi %s4502_s15, %s6196_s15   ;;  %s4466_s14 = sphi %s4500_s14, %s6195_s14   ;;  %s4462_s13 = sphi %s4498_s13, %s6194_s13   ;;  %s4458_s12 = sphi %s4496_s12, %s6193_s12  }
   0x4   : > { %p23_p0 = scmp.ge.s32.totalorder %s22_s17, 2  ;;  %p3657_p1 = scmp.ge.s32.totalorder %s4474_s16, 1 }
   0x5   : > { %p157_p2 = scmp.lt.s32.totalorder %s4474_s16, 5 }
   0x6   : > { %s6198_s17 = smov (%p23_p0, %s22_s17), 0  ;;  %s6200_s18 = smov (!%p23_p0, %s25_s18), %s4470_s15 }
   0x7   : > { %p158_p3 = pnand %p3657_p1, %p157_p2  ;;  %p27_p4 = scmp.ge.s32.totalorder %s6200_s18, 2 }
   0x9   : > { %s6202_s18 = smov (%p27_p4, %s6200_s18), 0  ;;  %161 = sbr.rel (%p158_p3) target bundleno = 925 (0x39d), region = 32 }
   0xe   : > { %v3663_v0 = vld [vmem:[%s6061_s1 + $0x4] sm:$0xf]  ;;  %vm375_vm0 = vcmask 1043456   ;;  %v3730_v1 = vld [vmem:[%s6061_s1 + $0x8] sm:$0xf]  ;;  %p190_p5 = scmp.lt.s32.totalorder %s4462_s13, 1 }
   0xf   : > { %3664 = vmatpush.msk.msra.mxu0 %vm375_vm0, %v3663_v0  ;;  %3731 = vmatpush.msk.msra.mxu2 %vm375_vm0, %v3730_v1  ;;  %v3796_v2 = vld [vmem:[%s6061_s1 + $0xc] sm:$0xf]  ;;  %p192_p6 = scmp.lt.s32.totalorder %s4458_s12, 1  ;;  %v4027_v3 = vld [vmem:[%s6061_s1 + $0x1c] sm:$0xf]  ;;  %vm278_vm1 = vcmask 31744  }
  0x10   : > { %3797 = vmatpush.msk.msra.mxu3 %vm375_vm0, %v3796_v2  ;;  %s6204_s13 = smov (!%p190_p5, %s4462_s13), 1  ;;  %v243_v4 = vld [vmem:[%s6061_s1] sm:$0xf]  ;;  %v3862_v5 = vld [vmem:[%s6061_s1 + $0x10] sm:$0xf] }
  0x11   : > { %4028 = vmatpush.msk.msrb.mxu2 %vm375_vm0, %v4027_v3  ;;  %s193_s4 = scalar_select %p192_p6, %s4458_s12, 1  ;;  %3697 = vmatpush.msk.msra.mxu1 %vm375_vm0, %v243_v4  ;;  %v3994_v6 = vld [vmem:[%s6061_s1 + $0x18] sm:$0xf]  ;;  %v3928_v7 = vld [vmem:[%s6061_s1 + $0x14] sm:$0xf] }
  0x12   : > { %3863 = vmatpush.msk.msrb.mxu0 %vm375_vm0, %v3862_v5  ;;  %s4393_s9 = smul.u32 100, %s6204_s13  ;;  %4061 = vmatpush.msk.msrb.mxu3 %vm375_vm0, %v3994_v6  ;;  %s3661_s5 = sshll.u32 %s6204_s13, 7 }
  0x13   : > { %3929 = vmatpush.msk.msrb.mxu1 %vm375_vm0, %v3928_v7  ;;  %s4392_s10 = smul.u32 50, %s193_s4  ;;  %s3659_s4 = sshll.u32 %s4458_s12, 3 }
  0x14   : > { %p202_p7 = scmp.lt.s32.totalorder %s3659_s4, 15 }
  0x15   : > { %s196_s11 = sadd.s32 %s4393_s9, %s4392_s10 }
  0x16   : > { %s3658_s19 = sshll.u32 %s196_s11, 3  ;;  %s6206_s4 = smov (!%p202_p7, %s3659_s4), 15 }
  0x17   : > { %s4568_s22 = scalar_lea.vmem %s6060_s0, %s3658_s19  ;;  %s3660_s12 = sshll.u32 %s6206_s4, 3 }
  0x18   : > { %v244_v8 = vld [vmem:[%s4568_s22 + $0x1] sm:$0xff]  ;;  %v245_v12 = vld [vmem:[%s4568_s22 + $0x9] sm:$0xff]  ;;  %v246_v16 = vld [vmem:[%s4568_s22 + $0x11] sm:$0xff]  ;;  %s206_s6 = sadd.s32 %s3661_s5, %s3660_s12 }
  0x19   : > { %v704_v9 = vld [vmem:[%s4568_s22 + $0x2] sm:$0xff]  ;;  %3665 = vmatmul.msk.f32.vlgmr.msra.gmra.mxu0 %vm278_vm1, %v244_v8  ;;  %v705_v13 = vld [vmem:[%s4568_s22 + $0xa] sm:$0xff]  ;;  %v706_v17 = vld [vmem:[%s4568_s22 + $0x12] sm:$0xff]  ;;  %s3662_s7 = sshll.u32 %s206_s6, 3 }
  0x1a   : > { %v4573_v10 = vld [vmem:[%s4568_s22 + $0x28] sm:$0xff]  ;;  %3732 = vmatmul.msk.f32.vlgmr.msra.gmra.mxu2 %vm278_vm1, %v704_v9  ;;  %v211_v11 = vld [vmem:[%s4568_s22] sm:$0xff]  ;;  %v4584_v14 = vld [vmem:[%s4568_s22 + $0x30] sm:$0xff]  ;;  %s5289_s11 = scalar_lea.vmem %s6063_s3, %s3662_s7 }
  0x1b   : > { %3798 = vmatmul.msk.f32.vlgmr.msra.gmra.mxu3 %vm278_vm1, %v4573_v10  ;;  %3698 = vmatmul.msk.f32.vlgmr.msra.gmra.mxu1 %vm278_vm1, %v211_v11  ;;  %v212_v15 = vld [vmem:[%s4568_s22 + $0x8] sm:$0xff]  ;;  %v4595_v18 = vld [vmem:[%s4568_s22 + $0x38] sm:$0xff]  ;;  %v213_v19 = vld [vmem:[%s4568_s22 + $0x10] sm:$0xff] }
  0x1c   : > { %v247_v20 = vld [vmem:[%s4568_s22 + $0x19] sm:$0xff]  ;;  %v4615_v24 = vld [vmem:[%s4568_s22 + $0x29] sm:$0xff]  ;;  %v4632_v27 = vld [vmem:[%s4568_s22 + $0x31] sm:$0xff] }
  0x1d   : > { %v707_v21 = vld [vmem:[%s4568_s22 + $0x1a] sm:$0xff]  ;;  %v4618_v25 = vld [vmem:[%s4568_s22 + $0x2a] sm:$0xff]  ;;  %v4635_v28 = vld [vmem:[%s4568_s22 + $0x32] sm:$0xff] }
  0x1e   : > { %v4606_v22 = vld [vmem:[%s4568_s22 + $0x40] sm:$0xff]  ;;  %v214_v23 = vld [vmem:[%s4568_s22 + $0x18] sm:$0xff]  ;;  %v4621_v26 = vld [vmem:[%s4568_s22 + $0x50] sm:$0xff] }
  0x1f   : > { %v4638_v29 = vld [vmem:[%s4568_s22 + $0x58] sm:$0xff]  ;;  %v4655_v32 = vld [vmem:[%s4568_s22 + $0x60] sm:$0xff]  ;;  %v4672_v35 = vld [vmem:[%s4568_s22 + $0x68] sm:$0xff] }
  0x20   : > { %v4649_v30 = vld [vmem:[%s4568_s22 + $0x39] sm:$0xff]  ;;  %v4666_v33 = vld [vmem:[%s4568_s22 + $0x41] sm:$0xff]  ;;  %v4683_v36 = vld [vmem:[%s4568_s22 + $0x51] sm:$0xff] }
  0x21   : > { %3666 = vmatmul.msk.f32.gmra.mxu0 %vm278_vm1, %v245_v12  ;;  %v4652_v31 = vld [vmem:[%s4568_s22 + $0x3a] sm:$0xff]  ;;  %v4669_v34 = vld [vmem:[%s4568_s22 + $0x42] sm:$0xff]  ;;  %v4686_v37 = vld [vmem:[%s4568_s22 + $0x52] sm:$0xff] }
  0x22   : > { %3733 = vmatmul.msk.f32.gmra.mxu2 %vm278_vm1, %v705_v13  ;;  %v4689_v38 = vld [vmem:[%s4568_s22 + $0x78] sm:$0xff]  ;;  %v4706_v41 = vld [vmem:[%s4568_s22 + $0x80] sm:$0xff]  ;;  %v4723_v44 = vld [vmem:[%s4568_s22 + $0x88] sm:$0xff] }
  0x23   : > { %3799 = vmatmul.msk.f32.gmra.mxu3 %vm278_vm1, %v4584_v14  ;;  %3699 = vmatmul.msk.f32.gmra.mxu1 %vm278_vm1, %v212_v15  ;;  %v4700_v39 = vld [vmem:[%s4568_s22 + $0x59] sm:$0xff]  ;;  %v4717_v42 = vld [vmem:[%s4568_s22 + $0x61] sm:$0xff]  ;;  %v4734_v45 = vld [vmem:[%s4568_s22 + $0x69] sm:$0xff] }
  0x24   : > { %v4703_v40 = vld [vmem:[%s4568_s22 + $0x5a] sm:$0xff]  ;;  %v4720_v43 = vld [vmem:[%s4568_s22 + $0x62] sm:$0xff]  ;;  %v4737_v46 = vld [vmem:[%s4568_s22 + $0x6a] sm:$0xff] }
  0x25   : > { %v4740_v47 = vld [vmem:[%s4568_s22 + $0x90] sm:$0xff]  ;;  %v4751_v48 = vld [vmem:[%s4568_s22 + $0x79] sm:$0xff]  ;;  %v4768_v51 = vld [vmem:[%s4568_s22 + $0x81] sm:$0xff] }
  0x26   : > { %v4754_v49 = vld [vmem:[%s4568_s22 + $0x7a] sm:$0xff]  ;;  %v4771_v52 = vld [vmem:[%s4568_s22 + $0x82] sm:$0xff]  ;;  %v4788_v55 = vld [vmem:[%s4568_s22 + $0x8a] sm:$0xff] }
  0x27   : > { %v4757_v50 = vld [vmem:[%s4568_s22 + $0xa0] sm:$0xff]  ;;  %v4774_v53 = vld [vmem:[%s4568_s22 + $0xa8] sm:$0xff]  ;;  %v4791_v56 = vld [vmem:[%s4568_s22 + $0xb0] sm:$0xff] }
  0x28   : > { %v4785_v54 = vld [vmem:[%s4568_s22 + $0x89] sm:$0xff]  ;;  %v4802_v57 = vld [vmem:[%s4568_s22 + $0x91] sm:$0xff]  ;;  %v4819_v61 = vld [vmem:[%s4568_s22 + $0xa1] sm:$0xff] }
  0x29   : > { %3667 = vmatmul.msk.f32.gmra.mxu0 %vm278_vm1, %v246_v16  ;;  %v4805_v58 = vld [vmem:[%s4568_s22 + $0x92] sm:$0xff]  ;;  %v4822_v62 = vld [vmem:[%s4568_s22 + $0xa2] sm:$0xff]  ;;  %v4839_v7 = vld [vmem:[%s4568_s22 + $0xaa] sm:$0xff] }
  0x2a   : > { %3734 = vmatmul.msk.f32.gmra.mxu2 %vm278_vm1, %v706_v17  ;;  %v4808_v59 = vld [vmem:[%s4568_s22 + $0xb8] sm:$0xff]  ;;  %v4825_v0 = vld [vmem:[%s4568_s22 + $0xc8] sm:$0xff]  ;;  %v4844_v11 = vld [vmem:[%s4568_s22 + $0xd0] sm:$0xff] }
  0x2b   : > { %3800 = vmatmul.msk.f32.gmra.mxu3 %vm278_vm1, %v4595_v18  ;;  %3700 = vmatmul.msk.f32.gmra.mxu1 %vm278_vm1, %v213_v19  ;;  %6101 = vst [vmem:[#allocation2_spill] sm:$0xff] %v4808_v59  ;;  %v4836_v6 = vld [vmem:[%s4568_s22 + $0xa9] sm:$0xff]  ;;  %v4855_v19 = vld [vmem:[%s4568_s22 + $0xb1] sm:$0xff] }
  0x2c   : > { %6102 = vst [vmem:[#allocation3_spill] sm:$0xff] %v4825_v0 }
  0x2d   : > { %6104 = vst [vmem:[#allocation5_spill] sm:$0xff] %v4844_v11 }
  0x31   : > { %3668 = vmatmul.msk.f32.gmra.mxu0 %vm278_vm1, %v247_v20  ;;  %v4858_v20 = vld [vmem:[%s4568_s22 + $0xb2] sm:$0xff] }
  0x32   : > { %3735 = vmatmul.msk.f32.gmra.mxu2 %vm278_vm1, %v707_v21 }
  0x33   : > { %3801 = vmatmul.msk.f32.gmra.mxu3 %vm278_vm1, %v4606_v22  ;;  %3701 = vmatmul.msk.f32.gmra.mxu1 %vm278_vm1, %v214_v23 }
  0x39   : > { %3669 = vmatmul.msk.f32.gmra.mxu0 %vm278_vm1, %v4615_v24 }
  0x3a   : > { %3736 = vmatmul.msk.f32.gmra.mxu2 %vm278_vm1, %v4618_v25 }
  0x3b   : > { %3802 = vmatmul.msk.f32.gmra.mxu3 %vm278_vm1, %v4621_v26  ;;  %3702 = vmatmul.msk.f32.gmra.mxu1 %vm278_vm1, %v4573_v10 }
  0x41   : > { %3670 = vmatmul.msk.f32.gmra.mxu0 %vm278_vm1, %v4632_v27 }
  0x42   : > { %3737 = vmatmul.msk.f32.gmra.mxu2 %vm278_vm1, %v4635_v28 }
  0x43   : > { %3803 = vmatmul.msk.f32.gmra.mxu3 %vm278_vm1, %v4638_v29  ;;  %3703 = vmatmul.msk.f32.gmra.mxu1 %vm278_vm1, %v4584_v14 }
  0x49   : > { %3671 = vmatmul.msk.f32.gmra.mxu0 %vm278_vm1, %v4649_v30 }
  0x4a   : > { %3738 = vmatmul.msk.f32.gmra.mxu2 %vm278_vm1, %v4652_v31 }
  0x4b   : > { %3804 = vmatmul.msk.f32.gmra.mxu3 %vm278_vm1, %v4655_v32  ;;  %3704 = vmatmul.msk.f32.gmra.mxu1 %vm278_vm1, %v4595_v18 }
  0x51   : > { %3672 = vmatmul.msk.f32.gmra.mxu0 %vm278_vm1, %v4666_v33 }
  0x52   : > { %3739 = vmatmul.msk.f32.gmra.mxu2 %vm278_vm1, %v4669_v34 }
  0x53   : > { %3805 = vmatmul.msk.f32.gmra.mxu3 %vm278_vm1, %v4672_v35  ;;  %3705 = vmatmul.msk.f32.gmra.mxu1 %vm278_vm1, %v4606_v22 }
  0x59   : > { %3673 = vmatmul.msk.f32.gmra.mxu0 %vm278_vm1, %v4683_v36 }
  0x5a   : > { %3740 = vmatmul.msk.f32.gmra.mxu2 %vm278_vm1, %v4686_v37 }
  0x5b   : > { %3806 = vmatmul.msk.f32.gmra.mxu3 %vm278_vm1, %v4689_v38  ;;  %3706 = vmatmul.msk.f32.gmra.mxu1 %vm278_vm1, %v4621_v26 }
  0x61   : > { %3674 = vmatmul.msk.f32.gmra.mxu0 %vm278_vm1, %v4700_v39 }
  0x62   : > { %3741 = vmatmul.msk.f32.gmra.mxu2 %vm278_vm1, %v4703_v40 }
  0x63   : > { %3807 = vmatmul.msk.f32.gmra.mxu3 %vm278_vm1, %v4706_v41  ;;  %3707 = vmatmul.msk.f32.gmra.mxu1 %vm278_vm1, %v4638_v29 }
  0x69   : > { %3675 = vmatmul.msk.f32.gmra.mxu0 %vm278_vm1, %v4717_v42 }
  0x6a   : > { %3742 = vmatmul.msk.f32.gmra.mxu2 %vm278_vm1, %v4720_v43 }
  0x6b   : > { %3808 = vmatmul.msk.f32.gmra.mxu3 %vm278_vm1, %v4723_v44  ;;  %3708 = vmatmul.msk.f32.gmra.mxu1 %vm278_vm1, %v4655_v32 }
  0x71   : > { %3676 = vmatmul.msk.f32.gmra.mxu0 %vm278_vm1, %v4734_v45 }
  0x72   : > { %3743 = vmatmul.msk.f32.gmra.mxu2 %vm278_vm1, %v4737_v46 }
  0x73   : > { %3809 = vmatmul.msk.f32.gmra.mxu3 %vm278_vm1, %v4740_v47  ;;  %3709 = vmatmul.msk.f32.gmra.mxu1 %vm278_vm1, %v4672_v35 }
  0x79   : > { %3677 = vmatmul.msk.f32.gmra.mxu0 %vm278_vm1, %v4751_v48 }
  0x7a   : > { %3744 = vmatmul.msk.f32.gmra.mxu2 %vm278_vm1, %v4754_v49 }
  0x7b   : > { %3810 = vmatmul.msk.f32.gmra.mxu3 %vm278_vm1, %v4757_v50  ;;  %3710 = vmatmul.msk.f32.gmra.mxu1 %vm278_vm1, %v4689_v38 }
  0x81   : > { %3678 = vmatmul.msk.f32.gmra.mxu0 %vm278_vm1, %v4768_v51 }
  0x82   : > { %3745 = vmatmul.msk.f32.gmra.mxu2 %vm278_vm1, %v4771_v52 }
  0x83   : > { %3811 = vmatmul.msk.f32.gmra.mxu3 %vm278_vm1, %v4774_v53  ;;  %3711 = vmatmul.msk.f32.gmra.mxu1 %vm278_vm1, %v4706_v41 }
  0x89   : > { %3679 = vmatmul.msk.f32.gmra.mxu0 %vm278_vm1, %v4785_v54 }
  0x8a   : > { %3746 = vmatmul.msk.f32.gmra.mxu2 %vm278_vm1, %v4788_v55 }
  0x8b   : > { %3812 = vmatmul.msk.f32.gmra.mxu3 %vm278_vm1, %v4791_v56  ;;  %3712 = vmatmul.msk.f32.gmra.mxu1 %vm278_vm1, %v4723_v44 }
  0x91   : > { %3680 = vmatmul.msk.f32.gmra.mxu0 %vm278_vm1, %v4802_v57 }
  0x92   : > { %3747 = vmatmul.msk.f32.gmra.mxu2 %vm278_vm1, %v4805_v58 }
  0x93   : > { %3813 = vmatmul.msk.f32.gmra.mxu3 %vm278_vm1, %v4808_v59  ;;  %3713 = vmatmul.msk.f32.gmra.mxu1 %vm278_vm1, %v4740_v47 }
  0x96   : > { %v396_v60 = vpop.f32.mrf.mxu0 }
  0x98   : > { %v608_v63 = vpop.f32.mrf.mxu1 }
  0x99   : > { %3681 = vmatmul.msk.f32.gmra.mxu0 %vm278_vm1, %v4819_v61  ;;  %v609_v1 = vadd.f32 %v608_v63, %v396_v60  ;;  %v4863_v60 = vld [vmem:[%s4568_s22 + $0xd8] sm:$0xff] }
  0x9a   : > { %3748 = vmatmul.msk.f32.gmra.mxu2 %vm278_vm1, %v4822_v62  ;;  %6106 = vst [vmem:[#allocation7_spill] sm:$0xff] %v4863_v60 }
  0x9b   : > { %3814 = vmatmul.msk.f32.gmra.mxu3 %vm278_vm1, %v4825_v0  ;;  %3714 = vmatmul.msk.f32.gmra.mxu1 %vm278_vm1, %v4757_v50 }
  0x9d   : > { %v854_v2 = vpop.f32.mrf.mxu2 }
  0x9e   : > { %v950_v3 = vadd.f32 %v854_v2, %v609_v1  ;;  %v1133_v4 = vpop.f32.mrf.mxu3  ;;  %v399_v5 = vpop.f32.mrf.mxu0 }
  0xa0   : > { %v4841_v8 = vadd.f32 %v1133_v4, %v950_v3  ;;  %v611_v9 = vpop.f32.mrf.mxu1 }
  0xa1   : > { %3682 = vmatmul.msk.f32.gmra.mxu0 %vm278_vm1, %v4836_v6  ;;  %v612_v12 = vadd.f32 %v611_v9, %v399_v5  ;;  %v4874_v5 = vld [vmem:[%s4568_s22 + $0xb9] sm:$0xff] }
  0xa2   : > { %6103 = vst [vmem:[#allocation4_spill] sm:$0xff] %v4841_v8  ;;  %3749 = vmatmul.msk.f32.gmra.mxu2 %vm278_vm1, %v4839_v7  ;;  %v4877_v9 = vld [vmem:[%s4568_s22 + $0xba] sm:$0xff]  ;;  %v4901_v8 = vld [vmem:[%s4568_s22 + $0xf0] sm:$0xff] }
  0xa3   : > { %3815 = vmatmul.msk.f32.gmra.mxu3 %vm278_vm1, %v4844_v11  ;;  %3715 = vmatmul.msk.f32.gmra.mxu1 %vm278_vm1, %v4774_v53  ;;  %6107 = vst [vmem:[#allocation8_spill] sm:$0xff] %v4877_v9 }
  0xa4   : > { %6113 = vst [vmem:[#allocation14_spill] sm:$0xff] %v4901_v8 }
  0xa5   : > { %v857_v13 = vpop.f32.mrf.mxu2 }
  0xa6   : > { %v951_v15 = vadd.f32 %v857_v13, %v612_v12  ;;  %v1136_v16 = vpop.f32.mrf.mxu3  ;;  %v402_v17 = vpop.f32.mrf.mxu0 }
  0xa8   : > { %v4860_v21 = vadd.f32 %v1136_v16, %v951_v15  ;;  %v614_v23 = vpop.f32.mrf.mxu1  ;;  %v4882_v15 = vld [vmem:[%s4568_s22 + $0xe0] sm:$0xff] }
  0xa9   : > { %3683 = vmatmul.msk.f32.gmra.mxu0 %vm278_vm1, %v4855_v19  ;;  %v615_v63 = vadd.f32 %v614_v23, %v402_v17  ;;  %6109 = vst [vmem:[#allocation10_spill] sm:$0xff] %v4882_v15 }
  0xaa   : > { %6105 = vst [vmem:[#allocation6_spill] sm:$0xff] %v4860_v21  ;;  %3750 = vmatmul.msk.f32.gmra.mxu2 %vm278_vm1, %v4858_v20 }
  0xab   : > { %3816 = vmatmul.msk.f32.gmra.mxu3 %vm278_vm1, %v4863_v60  ;;  %3716 = vmatmul.msk.f32.gmra.mxu1 %vm278_vm1, %v4791_v56 }
  0xad   : > { %v860_v1 = vpop.f32.mrf.mxu2 }
  0xae   : > { %v952_v2 = vadd.f32 %v860_v1, %v615_v63  ;;  %v1139_v3 = vpop.f32.mrf.mxu3  ;;  %v405_v4 = vpop.f32.mrf.mxu0 }
  0xb0   : > { %v4879_v12 = vadd.f32 %v1139_v3, %v952_v2  ;;  %v617_v13 = vpop.f32.mrf.mxu1  ;;  %v4893_v2 = vld [vmem:[%s4568_s22 + $0xc9] sm:$0xff] }
  0xb1   : > { %3684 = vmatmul.msk.f32.gmra.mxu0 %vm278_vm1, %v4874_v5  ;;  %v618_v16 = vadd.f32 %v617_v13, %v405_v4  ;;  %6110 = vst [vmem:[#allocation11_spill] sm:$0xff] %v4893_v2  ;;  %v4896_v3 = vld [vmem:[%s4568_s22 + $0xca] sm:$0xff] }
  0xb2   : > { %6108 = vst [vmem:[#allocation9_spill] sm:$0xff] %v4879_v12  ;;  %3751 = vmatmul.msk.f32.gmra.mxu2 %vm278_vm1, %v4877_v9  ;;  %v4920_v9 = vld [vmem:[%s4568_s22 + $0xf8] sm:$0xff] }
  0xb3   : > { %3817 = vmatmul.msk.f32.gmra.mxu3 %vm278_vm1, %v4882_v15  ;;  %3717 = vmatmul.msk.f32.gmra.mxu1 %vm278_vm1, %v4808_v59  ;;  %6111 = vst [vmem:[#allocation12_spill] sm:$0xff] %v4896_v3  ;;  %v3792_v59 = vld [vmem:[%s4568_s22 + $0x140] sm:$0xff] }
  0xb4   : > { %6117 = vst [vmem:[#allocation18_spill] sm:$0xff] %v4920_v9 }
  0xb5   : > { %v863_v17 = vpop.f32.mrf.mxu2 }
  0xb6   : > { %v953_v23 = vadd.f32 %v863_v17, %v618_v16  ;;  %v1142_v63 = vpop.f32.mrf.mxu3  ;;  %v408_v1 = vpop.f32.mrf.mxu0 }
  0xb8   : > { %v4898_v12 = vadd.f32 %v1142_v63, %v953_v23  ;;  %v620_v21 = vpop.f32.mrf.mxu1  ;;  %v4912_v63 = vld [vmem:[%s4568_s22 + $0xd1] sm:$0xff] }
  0xb9   : > { %3685 = vmatmul.msk.f32.gmra.mxu0 %vm278_vm1, %v4893_v2  ;;  %v621_v4 = vadd.f32 %v620_v21, %v408_v1  ;;  %6114 = vst [vmem:[#allocation15_spill] sm:$0xff] %v4912_v63 }
  0xba   : > { %6112 = vst [vmem:[#allocation13_spill] sm:$0xff] %v4898_v12  ;;  %3752 = vmatmul.msk.f32.gmra.mxu2 %vm278_vm1, %v4896_v3  ;;  %v4915_v12 = vld [vmem:[%s4568_s22 + $0xd2] sm:$0xff] }
  0xbb   : > { %3818 = vmatmul.msk.f32.gmra.mxu3 %vm278_vm1, %v4901_v8  ;;  %3718 = vmatmul.msk.f32.gmra.mxu1 %vm278_vm1, %v4825_v0  ;;  %6115 = vst [vmem:[#allocation16_spill] sm:$0xff] %v4915_v12  ;;  %v3786_v0 = vld [vmem:[%s4568_s22 + $0x100] sm:$0xff] }
  0xbd   : > { %v866_v13 = vpop.f32.mrf.mxu2 }
  0xbe   : > { %v954_v16 = vadd.f32 %v866_v13, %v621_v4  ;;  %v1145_v17 = vpop.f32.mrf.mxu3  ;;  %v411_v23 = vpop.f32.mrf.mxu0 }
  0xc0   : > { %v4917_v2 = vadd.f32 %v1145_v17, %v954_v16  ;;  %v623_v3 = vpop.f32.mrf.mxu1  ;;  %v4931_v17 = vld [vmem:[%s4568_s22 + $0xd9] sm:$0xff] }
  0xc1   : > { %3686 = vmatmul.msk.f32.gmra.mxu0 %vm278_vm1, %v4912_v63  ;;  %v624_v21 = vadd.f32 %v623_v3, %v411_v23  ;;  %6118 = vst [vmem:[#allocation19_spill] sm:$0xff] %v4931_v17 }
  0xc2   : > { %6116 = vst [vmem:[#allocation17_spill] sm:$0xff] %v4917_v2  ;;  %3753 = vmatmul.msk.f32.gmra.mxu2 %vm278_vm1, %v4915_v12  ;;  %v4934_v2 = vld [vmem:[%s4568_s22 + $0xda] sm:$0xff] }
  0xc3   : > { %3819 = vmatmul.msk.f32.gmra.mxu3 %vm278_vm1, %v4920_v9  ;;  %3719 = vmatmul.msk.f32.gmra.mxu1 %vm278_vm1, %v4844_v11  ;;  %6119 = vst [vmem:[#allocation20_spill] sm:$0xff] %v4934_v2  ;;  %v3787_v11 = vld [vmem:[%s4568_s22 + $0x108] sm:$0xff] }
  0xc5   : > { %v869_v1 = vpop.f32.mrf.mxu2 }
  0xc6   : > { %v955_v4 = vadd.f32 %v869_v1, %v624_v21  ;;  %v1148_v13 = vpop.f32.mrf.mxu3  ;;  %v414_v16 = vpop.f32.mrf.mxu0 }
  0xc8   : > { %v4936_v63 = vadd.f32 %v1148_v13, %v955_v4  ;;  %v626_v12 = vpop.f32.mrf.mxu1  ;;  %v4947_v13 = vld [vmem:[%s4568_s22 + $0xe1] sm:$0xff] }
  0xc9   : > { %3687 = vmatmul.msk.f32.gmra.mxu0 %vm278_vm1, %v4931_v17  ;;  %v627_v3 = vadd.f32 %v626_v12, %v414_v16  ;;  %6121 = vst [vmem:[#allocation22_spill] sm:$0xff] %v4947_v13 }
  0xca   : > { %6120 = vst [vmem:[#allocation21_spill] sm:$0xff] %v4936_v63  ;;  %3754 = vmatmul.msk.f32.gmra.mxu2 %vm278_vm1, %v4934_v2  ;;  %v4950_v63 = vld [vmem:[%s4568_s22 + $0xe2] sm:$0xff] }
  0xcb   : > { %3820 = vmatmul.msk.f32.gmra.mxu3 %vm278_vm1, %v3786_v0  ;;  %3720 = vmatmul.msk.f32.gmra.mxu1 %vm278_vm1, %v4863_v60  ;;  %6122 = vst [vmem:[#allocation23_spill] sm:$0xff] %v4950_v63  ;;  %v3788_v60 = vld [vmem:[%s4568_s22 + $0x118] sm:$0xff] }
  0xcd   : > { %v872_v23 = vpop.f32.mrf.mxu2 }
  0xce   : > { %v956_v21 = vadd.f32 %v872_v23, %v627_v3  ;;  %v1151_v1 = vpop.f32.mrf.mxu3  ;;  %v417_v4 = vpop.f32.mrf.mxu0 }
  0xd0   : > { %v4952_v17 = vadd.f32 %v1151_v1, %v956_v21  ;;  %v629_v2 = vpop.f32.mrf.mxu1  ;;  %v4963_v1 = vld [vmem:[%s4568_s22 + $0xf1] sm:$0xff] }
  0xd1   : > { %3688 = vmatmul.msk.f32.gmra.mxu0 %vm278_vm1, %v4947_v13  ;;  %v630_v12 = vadd.f32 %v629_v2, %v417_v4  ;;  %6124 = vst [vmem:[#allocation25_spill] sm:$0xff] %v4963_v1 }
  0xd2   : > { %6123 = vst [vmem:[#allocation24_spill] sm:$0xff] %v4952_v17  ;;  %3755 = vmatmul.msk.f32.gmra.mxu2 %vm278_vm1, %v4950_v63  ;;  %v4966_v17 = vld [vmem:[%s4568_s22 + $0xf2] sm:$0xff] }
  0xd3   : > { %3821 = vmatmul.msk.f32.gmra.mxu3 %vm278_vm1, %v3787_v11  ;;  %3721 = vmatmul.msk.f32.gmra.mxu1 %vm278_vm1, %v4882_v15  ;;  %6125 = vst [vmem:[#allocation26_spill] sm:$0xff] %v4966_v17  ;;  %v4987_v15 = vld [vmem:[%s4568_s22 + $0x120] sm:$0xff] }
  0xd5   : > { %v875_v16 = vpop.f32.mrf.mxu2 }
  0xd6   : > { %v957_v3 = vadd.f32 %v875_v16, %v630_v12  ;;  %v1154_v23 = vpop.f32.mrf.mxu3  ;;  %v420_v21 = vpop.f32.mrf.mxu0 }
  0xd8   : > { %v4968_v13 = vadd.f32 %v1154_v23, %v957_v3  ;;  %v632_v63 = vpop.f32.mrf.mxu1  ;;  %v4979_v23 = vld [vmem:[%s4568_s22 + $0xf9] sm:$0xff] }
  0xd9   : > { %3689 = vmatmul.msk.f32.gmra.mxu0 %vm278_vm1, %v4963_v1  ;;  %v633_v2 = vadd.f32 %v632_v63, %v420_v21  ;;  %6127 = vst [vmem:[#allocation28_spill] sm:$0xff] %v4979_v23 }
  0xda   : > { %6126 = vst [vmem:[#allocation27_spill] sm:$0xff] %v4968_v13  ;;  %3756 = vmatmul.msk.f32.gmra.mxu2 %vm278_vm1, %v4966_v17  ;;  %v4982_v13 = vld [vmem:[%s4568_s22 + $0xfa] sm:$0xff] }
  0xdb   : > { %3822 = vmatmul.msk.f32.gmra.mxu3 %vm278_vm1, %v3788_v60  ;;  %3722 = vmatmul.msk.f32.gmra.mxu1 %vm278_vm1, %v4901_v8  ;;  %6128 = vst [vmem:[#allocation29_spill] sm:$0xff] %v4982_v13  ;;  %v5006_v8 = vld [vmem:[%s4568_s22 + $0x128] sm:$0xff] }
  0xdd   : > { %v878_v4 = vpop.f32.mrf.mxu2 }
  0xde   : > { %v958_v12 = vadd.f32 %v878_v4, %v633_v2  ;;  %v1157_v16 = vpop.f32.mrf.mxu3  ;;  %v423_v3 = vpop.f32.mrf.mxu0 }
  0xe0   : > { %v4984_v1 = vadd.f32 %v1157_v16, %v958_v12  ;;  %v635_v17 = vpop.f32.mrf.mxu1  ;;  %v4998_v16 = vld [vmem:[%s4568_s22 + $0x101] sm:$0xff] }
  0xe1   : > { %3690 = vmatmul.msk.f32.gmra.mxu0 %vm278_vm1, %v4979_v23  ;;  %v636_v63 = vadd.f32 %v635_v17, %v423_v3  ;;  %6130 = vst [vmem:[#allocation31_spill] sm:$0xff] %v4998_v16 }
  0xe2   : > { %6129 = vst [vmem:[#allocation30_spill] sm:$0xff] %v4984_v1  ;;  %3757 = vmatmul.msk.f32.gmra.mxu2 %vm278_vm1, %v4982_v13  ;;  %v5001_v1 = vld [vmem:[%s4568_s22 + $0x102] sm:$0xff] }
  0xe3   : > { %3823 = vmatmul.msk.f32.gmra.mxu3 %vm278_vm1, %v4987_v15  ;;  %3723 = vmatmul.msk.f32.gmra.mxu1 %vm278_vm1, %v4920_v9  ;;  %6131 = vst [vmem:[#allocation32_spill] sm:$0xff] %v5001_v1  ;;  %v5024_v9 = vld [vmem:[%s4568_s22 + $0x130] sm:$0xff] }
  0xe5   : > { %v881_v21 = vpop.f32.mrf.mxu2 }
  0xe6   : > { %v959_v2 = vadd.f32 %v881_v21, %v636_v63  ;;  %v1160_v4 = vpop.f32.mrf.mxu3  ;;  %v426_v12 = vpop.f32.mrf.mxu0 }
  0xe8   : > { %v5003_v23 = vadd.f32 %v1160_v4, %v959_v2  ;;  %v638_v13 = vpop.f32.mrf.mxu1  ;;  %v5016_v4 = vld [vmem:[%s4568_s22 + $0x109] sm:$0xff] }
  0xe9   : > { %3691 = vmatmul.msk.f32.gmra.mxu0 %vm278_vm1, %v4998_v16  ;;  %v639_v17 = vadd.f32 %v638_v13, %v426_v12  ;;  %6133 = vst [vmem:[#allocation34_spill] sm:$0xff] %v5016_v4 }
  0xea   : > { %6132 = vst [vmem:[#allocation33_spill] sm:$0xff] %v5003_v23  ;;  %3758 = vmatmul.msk.f32.gmra.mxu2 %vm278_vm1, %v5001_v1  ;;  %v5019_v23 = vld [vmem:[%s4568_s22 + $0x10a] sm:$0xff] }
  0xeb   : > { %3824 = vmatmul.msk.f32.gmra.mxu3 %vm278_vm1, %v5006_v8  ;;  %3724 = vmatmul.msk.f32.gmra.mxu1 %vm278_vm1, %v3786_v0 }
  0xed   : > { %v884_v3 = vpop.f32.mrf.mxu2 }
  0xee   : > { %v960_v63 = vadd.f32 %v884_v3, %v639_v17  ;;  %v1163_v21 = vpop.f32.mrf.mxu3  ;;  %v429_v2 = vpop.f32.mrf.mxu0 }
  0xf0   : > { %v5021_v16 = vadd.f32 %v1163_v21, %v960_v63  ;;  %v641_v1 = vpop.f32.mrf.mxu1  ;;  %v5034_v63 = vld [vmem:[%s4568_s22 + $0x119] sm:$0xff] }
  0xf1   : > { %3692 = vmatmul.msk.f32.gmra.mxu0 %vm278_vm1, %v5016_v4  ;;  %v642_v0 = vadd.f32 %v641_v1, %v429_v2  ;;  %6135 = vst [vmem:[#allocation36_spill] sm:$0xff] %v5034_v63  ;;  %v5037_v21 = vld [vmem:[%s4568_s22 + $0x11a] sm:$0xff]  ;;  %v4324_v2 = vld [vmem:[%s6061_s1 + $0x2c] sm:$0xf] }
  0xf2   : > { %6134 = vst [vmem:[#allocation35_spill] sm:$0xff] %v5021_v16  ;;  %3759 = vmatmul.msk.f32.gmra.mxu2 %vm278_vm1, %v5019_v23  ;;  %v4126_v1 = vld [vmem:[%s6061_s1 + $0x20] sm:$0xf]  ;;  %4325 = vmatpush.msk.msra.mxu3 %vm375_vm0, %v4324_v2 }
  0xf3   : > { %3825 = vmatmul.msk.f32.gmra.mxu3 %vm278_vm1, %v5024_v9  ;;  %3725 = vmatmul.msk.f32.gmra.mxu1 %vm278_vm1, %v3787_v11  ;;  %6136 = vst [vmem:[#allocation37_spill] sm:$0xff] %v5037_v21  ;;  %v4258_v11 = vld [vmem:[%s6061_s1 + $0x28] sm:$0xf] }
  0xf4   : > { %4259 = vmatpush.msk.msra.mxu2 %vm375_vm0, %v4258_v11  ;;  %4127 = vmatpush.msk.msra.mxu0 %vm375_vm0, %v4126_v1 }
  0xf5   : > { %v887_v13 = vpop.f32.mrf.mxu2 }
  0xf6   : > { %v961_v12 = vadd.f32 %v887_v13, %v642_v0  ;;  %v1166_v17 = vpop.f32.mrf.mxu3  ;;  %v432_v3 = vpop.f32.mrf.mxu0 }
  0xf8   : > { %v5039_v16 = vadd.f32 %v1166_v17, %v961_v12  ;;  %v644_v4 = vpop.f32.mrf.mxu1  ;;  %v5061_v17 = vld [vmem:[%s4568_s22 + $0x121] sm:$0xff] }
  0xf9   : > { %3693 = vmatmul.msk.f32.gmra.mxu0 %vm278_vm1, %v5034_v63  ;;  %v645_v0 = vadd.f32 %v644_v4, %v432_v3  ;;  %v3793_v4 = vld [vmem:[%s4568_s22 + $0x148] sm:$0xff]  ;;  %v4192_v3 = vld [vmem:[%s6061_s1 + $0x24] sm:$0xf] }
  0xfa   : > { %6137 = vst [vmem:[#allocation38_spill] sm:$0xff] %v5039_v16  ;;  %3760 = vmatmul.msk.f32.gmra.mxu2 %vm278_vm1, %v5037_v21  ;;  %v5064_v16 = vld [vmem:[%s4568_s22 + $0x122] sm:$0xff]  ;;  %4193 = vmatpush.msk.msra.mxu1 %vm375_vm0, %v4192_v3 }
  0xfb   : > { %3826 = vmatmul.msk.f32.gmra.mxu3 %vm278_vm1, %v3792_v59  ;;  %3726 = vmatmul.msk.f32.gmra.mxu1 %vm278_vm1, %v3788_v60  ;;  %6138 = vst [vmem:[#allocation39_spill] sm:$0xff] %v5064_v16 }
  0xfd   : > { %v890_v59 = vpop.f32.mrf.mxu2 }
  0xfe   : > { %v962_v60 = vadd.f32 %v890_v59, %v645_v0  ;;  %v1169_v13 = vpop.f32.mrf.mxu3  ;;  %v435_v12 = vpop.f32.mrf.mxu0 }
 0x100   : > { %v5066_v21 = vadd.f32 %v1169_v13, %v962_v60  ;;  %v647_v63 = vpop.f32.mrf.mxu1  ;;  %v5081_v60 = vld [vmem:[%s4568_s22 + $0x129] sm:$0xff] }
 0x101   : > { %3694 = vmatmul.msk.f32.gmra.mxu0 %vm278_vm1, %v5061_v17  ;;  %v648_v11 = vadd.f32 %v647_v63, %v435_v12  ;;  %6140 = vst [vmem:[#allocation41_spill] sm:$0xff] %v5081_v60  ;;  %v5084_v13 = vld [vmem:[%s4568_s22 + $0x12a] sm:$0xff] }
 0x102   : > { %6139 = vst [vmem:[#allocation40_spill] sm:$0xff] %v5066_v21  ;;  %3761 = vmatmul.msk.f32.gmra.mxu2 %vm278_vm1, %v5064_v16  ;;  %v3794_v16 = vld [vmem:[%s4568_s22 + $0x150] sm:$0xff] }
 0x103   : > { %3827 = vmatmul.msk.f32.gmra.mxu3 %vm278_vm1, %v3793_v4  ;;  %3727 = vmatmul.msk.f32.gmra.mxu1 %vm278_vm1, %v4987_v15 }
 0x105   : > { %v893_v1 = vpop.f32.mrf.mxu2 }
 0x106   : > { %v963_v2 = vadd.f32 %v893_v1, %v648_v11  ;;  %v1172_v0 = vpop.f32.mrf.mxu3  ;;  %v438_v59 = vpop.f32.mrf.mxu0  ;;  %v5097_v1 = vld [vmem:[%s4568_s22 + $0x131] sm:$0xff] }
 0x108   : > { %v5086_v3 = vadd.f32 %v1172_v0, %v963_v2  ;;  %v650_v21 = vpop.f32.mrf.mxu1  ;;  %v5100_v2 = vld [vmem:[%s4568_s22 + $0x132] sm:$0xff] }
 0x109   : > { %3695 = vmatmul.msk.f32.gmra.mxu0 %vm278_vm1, %v5081_v60  ;;  %v651_v15 = vadd.f32 %v650_v21, %v438_v59  ;;  %v3795_v60 = vld [vmem:[%s4568_s22 + $0x158] sm:$0xff] }
 0x10a   : > { %6141 = vst [vmem:[#allocation42_spill] sm:$0xff] %v5086_v3  ;;  %3762 = vmatmul.msk.f32.gmra.mxu2 %vm278_vm1, %v5084_v13 }
 0x10b   : > { %3828 = vmatmul.msk.f32.gmra.mxu3 %vm278_vm1, %v3794_v16  ;;  %3728 = vmatmul.msk.f32.gmra.mxu1 %vm278_vm1, %v5006_v8 }
 0x10d   : > { %v896_v63 = vpop.f32.mrf.mxu2 }
 0x10e   : > { %v964_v12 = vadd.f32 %v896_v63, %v651_v15  ;;  %v1175_v4 = vpop.f32.mrf.mxu3  ;;  %v441_v11 = vpop.f32.mrf.mxu0 }
 0x110   : > { %v5102_v0 = vadd.f32 %v1175_v4, %v964_v12  ;;  %v653_v3 = vpop.f32.mrf.mxu1 }
 0x111   : > { %3696 = vmatmul.msk.f32.gmra.mxu0 %vm278_vm1, %v5097_v1  ;;  %v654_v8 = vadd.f32 %v653_v3, %v441_v11 }
 0x112   : > { %3763 = vmatmul.msk.f32.gmra.mxu2 %vm278_vm1, %v5100_v2 }
 0x113   : > { %3829 = vmatmul.msk.f32.gmra.mxu3 %vm278_vm1, %v3795_v60  ;;  %3729 = vmatmul.msk.f32.gmra.mxu1 %vm278_vm1, %v5024_v9 }
 0x115   : > { %v899_v16 = vpop.f32.mrf.mxu2 }
 0x116   : > { %v965_v21 = vadd.f32 %v899_v16, %v654_v8  ;;  %v1178_v59 = vpop.f32.mrf.mxu3  ;;  %v444_v15 = vpop.f32.mrf.mxu0 }
 0x118   : > { %v5112_v63 = vadd.f32 %v1178_v59, %v965_v21  ;;  %v656_v12 = vpop.f32.mrf.mxu1 }
 0x119   : > { %3864 = vmatmul.msk.f32.vlgmr.msrb.gmra.mxu0 %vm278_vm1, %v4615_v24  ;;  %v657_v9 = vadd.f32 %v656_v12, %v444_v15 }
 0x11a   : > { %4029 = vmatmul.msk.f32.vlgmr.msrb.gmra.mxu2 %vm278_vm1, %v4615_v24 }
 0x11b   : > { %4062 = vmatmul.msk.f32.vlgmr.msrb.gmra.mxu3 %vm278_vm1, %v4573_v10  ;;  %3930 = vmatmul.msk.f32.vlgmr.msrb.gmra.mxu1 %vm278_vm1, %v4618_v25 }
 0x11d   : > { %v902_v60 = vpop.f32.mrf.mxu2 }
 0x11e   : > { %v966_v3 = vadd.f32 %v902_v60, %v657_v9  ;;  %v1181_v4 = vpop.f32.mrf.mxu3  ;;  %v447_v11 = vpop.f32.mrf.mxu0 }
 0x120   : > { %v5122_v8 = vadd.f32 %v1181_v4, %v966_v3  ;;  %v659_v16 = vpop.f32.mrf.mxu1 }
 0x121   : > { %3865 = vmatmul.msk.f32.gmra.mxu0 %vm278_vm1, %v4632_v27  ;;  %v660_v10 = vadd.f32 %v659_v16, %v447_v11 }
 0x122   : > { %4030 = vmatmul.msk.f32.gmra.mxu2 %vm278_vm1, %v4632_v27 }
 0x123   : > { %4063 = vmatmul.msk.f32.gmra.mxu3 %vm278_vm1, %v4584_v14  ;;  %3931 = vmatmul.msk.f32.gmra.mxu1 %vm278_vm1, %v4635_v28 }
 0x125   : > { %v905_v24 = vpop.f32.mrf.mxu2 }
 0x126   : > { %v967_v25 = vadd.f32 %v905_v24, %v660_v10  ;;  %v1184_v21 = vpop.f32.mrf.mxu3  ;;  %v450_v59 = vpop.f32.mrf.mxu0 }
 0x128   : > { %v5132_v15 = vadd.f32 %v1184_v21, %v967_v25  ;;  %v662_v12 = vpop.f32.mrf.mxu1 }
 0x129   : > { %3866 = vmatmul.msk.f32.gmra.mxu0 %vm278_vm1, %v4649_v30  ;;  %v663_v14 = vadd.f32 %v662_v12, %v450_v59 }
 0x12a   : > { %4031 = vmatmul.msk.f32.gmra.mxu2 %vm278_vm1, %v4649_v30 }
 0x12b   : > { %4064 = vmatmul.msk.f32.gmra.mxu3 %vm278_vm1, %v4595_v18  ;;  %3932 = vmatmul.msk.f32.gmra.mxu1 %vm278_vm1, %v4652_v31 }
 0x12d   : > { %v908_v27 = vpop.f32.mrf.mxu2 }
 0x12e   : > { %v968_v28 = vadd.f32 %v908_v27, %v663_v14  ;;  %v1187_v9 = vpop.f32.mrf.mxu3  ;;  %v453_v60 = vpop.f32.mrf.mxu0 }
 0x130   : > { %v5142_v3 = vadd.f32 %v1187_v9, %v968_v28  ;;  %v665_v4 = vpop.f32.mrf.mxu1 }
 0x131   : > { %3867 = vmatmul.msk.f32.gmra.mxu0 %vm278_vm1, %v4666_v33  ;;  %v666_v18 = vadd.f32 %v665_v4, %v453_v60 }
 0x132   : > { %4032 = vmatmul.msk.f32.gmra.mxu2 %vm278_vm1, %v4666_v33 }
 0x133   : > { %4065 = vmatmul.msk.f32.gmra.mxu3 %vm278_vm1, %v4606_v22  ;;  %3933 = vmatmul.msk.f32.gmra.mxu1 %vm278_vm1, %v4669_v34 }
 0x135   : > { %v911_v30 = vpop.f32.mrf.mxu2 }
 0x136   : > { %v969_v31 = vadd.f32 %v911_v30, %v666_v18  ;;  %v1190_v11 = vpop.f32.mrf.mxu3  ;;  %v456_v16 = vpop.f32.mrf.mxu0 }
 0x138   : > { %v5152_v10 = vadd.f32 %v1190_v11, %v969_v31  ;;  %v668_v24 = vpop.f32.mrf.mxu1 }
 0x139   : > { %3868 = vmatmul.msk.f32.gmra.mxu0 %vm278_vm1, %v4683_v36  ;;  %v669_v22 = vadd.f32 %v668_v24, %v456_v16 }
 0x13a   : > { %4033 = vmatmul.msk.f32.gmra.mxu2 %vm278_vm1, %v4683_v36 }
 0x13b   : > { %4066 = vmatmul.msk.f32.gmra.mxu3 %vm278_vm1, %v4621_v26  ;;  %3934 = vmatmul.msk.f32.gmra.mxu1 %vm278_vm1, %v4686_v37 }
 0x13d   : > { %v914_v33 = vpop.f32.mrf.mxu2 }
 0x13e   : > { %v970_v34 = vadd.f32 %v914_v33, %v669_v22  ;;  %v1193_v25 = vpop.f32.mrf.mxu3  ;;  %v459_v21 = vpop.f32.mrf.mxu0 }
 0x140   : > { %v5162_v59 = vadd.f32 %v1193_v25, %v970_v34  ;;  %v671_v12 = vpop.f32.mrf.mxu1 }
 0x141   : > { %3869 = vmatmul.msk.f32.gmra.mxu0 %vm278_vm1, %v4700_v39  ;;  %v672_v26 = vadd.f32 %v671_v12, %v459_v21 }
 0x142   : > { %4034 = vmatmul.msk.f32.gmra.mxu2 %vm278_vm1, %v4700_v39 }
 0x143   : > { %4067 = vmatmul.msk.f32.gmra.mxu3 %vm278_vm1, %v4638_v29  ;;  %3935 = vmatmul.msk.f32.gmra.mxu1 %vm278_vm1, %v4703_v40 }
 0x145   : > { %v917_v36 = vpop.f32.mrf.mxu2 }
 0x146   : > { %v971_v37 = vadd.f32 %v917_v36, %v672_v26  ;;  %v1196_v14 = vpop.f32.mrf.mxu3  ;;  %v462_v27 = vpop.f32.mrf.mxu0 }
 0x148   : > { %v5172_v28 = vadd.f32 %v1196_v14, %v971_v37  ;;  %v674_v9 = vpop.f32.mrf.mxu1 }
 0x149   : > { %3870 = vmatmul.msk.f32.gmra.mxu0 %vm278_vm1, %v4717_v42  ;;  %v675_v29 = vadd.f32 %v674_v9, %v462_v27 }
 0x14a   : > { %4035 = vmatmul.msk.f32.gmra.mxu2 %vm278_vm1, %v4717_v42 }
 0x14b   : > { %4068 = vmatmul.msk.f32.gmra.mxu3 %vm278_vm1, %v4655_v32  ;;  %3936 = vmatmul.msk.f32.gmra.mxu1 %vm278_vm1, %v4720_v43 }
 0x14d   : > { %v920_v39 = vpop.f32.mrf.mxu2 }
 0x14e   : > { %v972_v40 = vadd.f32 %v920_v39, %v675_v29  ;;  %v1199_v60 = vpop.f32.mrf.mxu3  ;;  %v465_v4 = vpop.f32.mrf.mxu0 }
 0x150   : > { %v5182_v18 = vadd.f32 %v1199_v60, %v972_v40  ;;  %v677_v30 = vpop.f32.mrf.mxu1 }
 0x151   : > { %3871 = vmatmul.msk.f32.gmra.mxu0 %vm278_vm1, %v4734_v45  ;;  %v678_v32 = vadd.f32 %v677_v30, %v465_v4 }
 0x152   : > { %4036 = vmatmul.msk.f32.gmra.mxu2 %vm278_vm1, %v4734_v45 }
 0x153   : > { %4069 = vmatmul.msk.f32.gmra.mxu3 %vm278_vm1, %v4672_v35  ;;  %3937 = vmatmul.msk.f32.gmra.mxu1 %vm278_vm1, %v4737_v46 }
 0x155   : > { %v923_v42 = vpop.f32.mrf.mxu2 }
 0x156   : > { %v973_v43 = vadd.f32 %v923_v42, %v678_v32  ;;  %v1202_v31 = vpop.f32.mrf.mxu3  ;;  %v468_v11 = vpop.f32.mrf.mxu0 }
 0x158   : > { %v5192_v16 = vadd.f32 %v1202_v31, %v973_v43  ;;  %v680_v24 = vpop.f32.mrf.mxu1 }
 0x159   : > { %3872 = vmatmul.msk.f32.gmra.mxu0 %vm278_vm1, %v4751_v48  ;;  %v681_v35 = vadd.f32 %v680_v24, %v468_v11 }
 0x15a   : > { %4037 = vmatmul.msk.f32.gmra.mxu2 %vm278_vm1, %v4751_v48 }
 0x15b   : > { %4070 = vmatmul.msk.f32.gmra.mxu3 %vm278_vm1, %v4689_v38  ;;  %3938 = vmatmul.msk.f32.gmra.mxu1 %vm278_vm1, %v4754_v49 }
 0x15d   : > { %v926_v45 = vpop.f32.mrf.mxu2 }
 0x15e   : > { %v974_v46 = vadd.f32 %v926_v45, %v681_v35  ;;  %v1205_v22 = vpop.f32.mrf.mxu3  ;;  %v471_v33 = vpop.f32.mrf.mxu0 }
 0x160   : > { %v5202_v34 = vadd.f32 %v1205_v22, %v974_v46  ;;  %v683_v25 = vpop.f32.mrf.mxu1 }
 0x161   : > { %3873 = vmatmul.msk.f32.gmra.mxu0 %vm278_vm1, %v4768_v51  ;;  %v684_v38 = vadd.f32 %v683_v25, %v471_v33 }
 0x162   : > { %4038 = vmatmul.msk.f32.gmra.mxu2 %vm278_vm1, %v4768_v51 }
 0x163   : > { %4071 = vmatmul.msk.f32.gmra.mxu3 %vm278_vm1, %v4706_v41  ;;  %3939 = vmatmul.msk.f32.gmra.mxu1 %vm278_vm1, %v4771_v52 }
 0x165   : > { %v929_v48 = vpop.f32.mrf.mxu2 }
 0x166   : > { %v975_v49 = vadd.f32 %v929_v48, %v684_v38  ;;  %v1208_v21 = vpop.f32.mrf.mxu3  ;;  %v474_v12 = vpop.f32.mrf.mxu0 }
 0x168   : > { %v5212_v26 = vadd.f32 %v1208_v21, %v975_v49  ;;  %v686_v36 = vpop.f32.mrf.mxu1  ;;  %v6144_v21 = vld [vmem:[#allocation4_spill] sm:$0xff] }
 0x169   : > { %3874 = vmatmul.msk.f32.gmra.mxu0 %vm278_vm1, %v4785_v54  ;;  %v687_v41 = vadd.f32 %v686_v36, %v474_v12  ;;  %v5280_v36 = vld [vmem:[%s6062_s2] ss:$0 sm:$0xff] }
 0x16a   : > { %4039 = vmatmul.msk.f32.gmra.mxu2 %vm278_vm1, %v4785_v54 }
 0x16b   : > { %4072 = vmatmul.msk.f32.gmra.mxu3 %vm278_vm1, %v4723_v44  ;;  %3940 = vmatmul.msk.f32.gmra.mxu1 %vm278_vm1, %v4788_v55 }
 0x16d   : > { %v932_v51 = vpop.f32.mrf.mxu2 }
 0x16e   : > { %v976_v52 = vadd.f32 %v932_v51, %v687_v41  ;;  %v1211_v37 = vpop.f32.mrf.mxu3  ;;  %v477_v14 = vpop.f32.mrf.mxu0  ;;  %v6145_v51 = vld [vmem:[#allocation11_spill] sm:$0xff] }
 0x170   : > { %v5222_v27 = vadd.f32 %v1211_v37, %v976_v52  ;;  %v689_v9 = vpop.f32.mrf.mxu1  ;;  %v6146_v52 = vld [vmem:[#allocation3_spill] sm:$0xff]  ;;  %v6147_v37 = vld [vmem:[#allocation12_spill] sm:$0xff] }
 0x171   : > { %3875 = vmatmul.msk.f32.gmra.mxu0 %vm278_vm1, %v4802_v57  ;;  %v690_v44 = vadd.f32 %v689_v9, %v477_v14 }
 0x172   : > { %4040 = vmatmul.msk.f32.gmra.mxu2 %vm278_vm1, %v4802_v57 }
 0x173   : > { %4073 = vmatmul.msk.f32.gmra.mxu3 %vm278_vm1, %v4740_v47  ;;  %3941 = vmatmul.msk.f32.gmra.mxu1 %vm278_vm1, %v4805_v58 }
 0x175   : > { %v935_v54 = vpop.f32.mrf.mxu2 }
 0x176   : > { %v977_v55 = vadd.f32 %v935_v54, %v690_v44  ;;  %v1214_v29 = vpop.f32.mrf.mxu3  ;;  %v480_v39 = vpop.f32.mrf.mxu0 }
 0x178   : > { %v5232_v40 = vadd.f32 %v1214_v29, %v977_v55  ;;  %v692_v60 = vpop.f32.mrf.mxu1  ;;  %v6148_v29 = vld [vmem:[#allocation6_spill] sm:$0xff] }
 0x179   : > { %3876 = vmatmul.msk.f32.gmra.mxu0 %vm278_vm1, %v4819_v61  ;;  %v693_v47 = vadd.f32 %v692_v60, %v480_v39 }
 0x17a   : > { %4041 = vmatmul.msk.f32.gmra.mxu2 %vm278_vm1, %v4819_v61 }
 0x17b   : > { %4074 = vmatmul.msk.f32.gmra.mxu3 %vm278_vm1, %v4757_v50  ;;  %3942 = vmatmul.msk.f32.gmra.mxu1 %vm278_vm1, %v4822_v62 }
 0x17d   : > { %v938_v57 = vpop.f32.mrf.mxu2 }
 0x17e   : > { %v978_v58 = vadd.f32 %v938_v57, %v693_v47  ;;  %v1217_v4 = vpop.f32.mrf.mxu3  ;;  %v483_v30 = vpop.f32.mrf.mxu0  ;;  %v6149_v57 = vld [vmem:[#allocation15_spill] sm:$0xff] }
 0x180   : > { %v5242_v32 = vadd.f32 %v1217_v4, %v978_v58  ;;  %v695_v42 = vpop.f32.mrf.mxu1  ;;  %v6150_v58 = vld [vmem:[#allocation5_spill] sm:$0xff]  ;;  %v6151_v4 = vld [vmem:[#allocation16_spill] sm:$0xff] }
 0x181   : > { %3877 = vmatmul.msk.f32.gmra.mxu0 %vm278_vm1, %v4836_v6  ;;  %v696_v50 = vadd.f32 %v695_v42, %v483_v30 }
 0x182   : > { %4042 = vmatmul.msk.f32.gmra.mxu2 %vm278_vm1, %v4836_v6 }
 0x183   : > { %4075 = vmatmul.msk.f32.gmra.mxu3 %vm278_vm1, %v4774_v53  ;;  %3943 = vmatmul.msk.f32.gmra.mxu1 %vm278_vm1, %v4839_v7 }
 0x185   : > { %v941_v61 = vpop.f32.mrf.mxu2 }
 0x186   : > { %v979_v62 = vadd.f32 %v941_v61, %v696_v50  ;;  %v1220_v43 = vpop.f32.mrf.mxu3  ;;  %v486_v31 = vpop.f32.mrf.mxu0 }
 0x188   : > { %v5253_v11 = vadd.f32 %v1220_v43, %v979_v62  ;;  %v698_v24 = vpop.f32.mrf.mxu1  ;;  %v6152_v43 = vld [vmem:[#allocation9_spill] sm:$0xff] }
 0x189   : > { %3878 = vmatmul.msk.f32.gmra.mxu0 %vm278_vm1, %v4855_v19  ;;  %v699_v53 = vadd.f32 %v698_v24, %v486_v31 }
 0x18a   : > { %4043 = vmatmul.msk.f32.gmra.mxu2 %vm278_vm1, %v4855_v19  ;;  %v6143_v19 = vld [vmem:[#allocation8_spill] sm:$0xff] }
 0x18b   : > { %4076 = vmatmul.msk.f32.gmra.mxu3 %vm278_vm1, %v4791_v56  ;;  %3944 = vmatmul.msk.f32.gmra.mxu1 %vm278_vm1, %v4858_v20  ;;  %v6142_v56 = vld [vmem:[#allocation2_spill] sm:$0xff] }
 0x18d   : > { %v944_v6 = vpop.f32.mrf.mxu2 }
 0x18e   : > { %v980_v7 = vadd.f32 %v944_v6, %v699_v53  ;;  %v1223_v35 = vpop.f32.mrf.mxu3  ;;  %v489_v45 = vpop.f32.mrf.mxu0  ;;  %v6153_v6 = vld [vmem:[#allocation19_spill] sm:$0xff] }
 0x190   : > { %v5263_v46 = vadd.f32 %v1223_v35, %v980_v7  ;;  %v701_v22 = vpop.f32.mrf.mxu1  ;;  %v6154_v7 = vld [vmem:[#allocation7_spill] sm:$0xff]  ;;  %v6155_v35 = vld [vmem:[#allocation20_spill] sm:$0xff] }
 0x191   : > { %3879 = vmatmul.msk.f32.gmra.mxu0 %vm278_vm1, %v4874_v5  ;;  %v702_v20 = vadd.f32 %v701_v22, %v489_v45 }
 0x192   : > { %4044 = vmatmul.msk.f32.gmra.mxu2 %vm278_vm1, %v4874_v5 }
 0x193   : > { %4077 = vmatmul.msk.f32.gmra.mxu3 %vm278_vm1, %v6142_v56  ;;  %3945 = vmatmul.msk.f32.gmra.mxu1 %vm278_vm1, %v6143_v19 }
 0x195   : > { %v947_v33 = vpop.f32.mrf.mxu2 }
 0x196   : > { %v981_v25 = vadd.f32 %v947_v33, %v702_v20  ;;  %v1226_v38 = vpop.f32.mrf.mxu3  ;;  %v1411_v48 = vpop.f32.mrf.mxu0  ;;  %v6156_v33 = vld [vmem:[#allocation13_spill] sm:$0xff] }
 0x197   : > { %v1507_v12 = vadd.f32 %v1411_v48, %v6144_v21  ;;  %v6157_v21 = vld [vmem:[#allocation22_spill] sm:$0xff] }
 0x198   : > { %v5274_v49 = vadd.f32 %v1226_v38, %v981_v25  ;;  %v1689_v5 = vpop.f32.mrf.mxu1 }
 0x199   : > { %v1785_v41 = vadd.f32 %v1689_v5, %v1507_v12  ;;  %3880 = vmatmul.msk.f32.gmra.mxu0 %vm278_vm1, %v6145_v51  ;;  %v6158_v12 = vld [vmem:[#allocation10_spill] sm:$0xff]  ;;  %v6159_v5 = vld [vmem:[#allocation23_spill] sm:$0xff] }
 0x19a   : > { %4045 = vmatmul.msk.f32.gmra.mxu2 %vm278_vm1, %v6145_v51 }
 0x19b   : > { %4078 = vmatmul.msk.f32.gmra.mxu3 %vm278_vm1, %v6146_v52  ;;  %3946 = vmatmul.msk.f32.gmra.mxu1 %vm278_vm1, %v6147_v37  ;;  %v1820_v14 = vadd.f32 %v5280_v36, %v1785_v41 }
 0x19d   : > { %v2068_v9 = vpop.f32.mrf.mxu2  ;;  %1852 = vst [vmem:[%s5289_s11] sm:$0xff] %v1820_v14 }
 0x19e   : > { %v2280_v44 = vpop.f32.mrf.mxu3  ;;  %v1414_v55 = vpop.f32.mrf.mxu0 }
 0x19f   : > { %v5297_v54 = vadd.f32 %v2280_v44, %v2068_v9  ;;  %v1508_v39 = vadd.f32 %v1414_v55, %v6148_v29  ;;  %v6160_v9 = vld [vmem:[#allocation17_spill] sm:$0xff] }
 0x1a0   : > { %v1692_v60 = vpop.f32.mrf.mxu1 }
 0x1a1   : > { %v1786_v47 = vadd.f32 %v1692_v60, %v1508_v39  ;;  %3881 = vmatmul.msk.f32.gmra.mxu0 %vm278_vm1, %v6149_v57  ;;  %v6161_v39 = vld [vmem:[#allocation25_spill] sm:$0xff]  ;;  %v6162_v60 = vld [vmem:[#allocation14_spill] sm:$0xff] }
 0x1a2   : > { %4046 = vmatmul.msk.f32.gmra.mxu2 %vm278_vm1, %v6149_v57 }
 0x1a3   : > { %4079 = vmatmul.msk.f32.gmra.mxu3 %vm278_vm1, %v6150_v58  ;;  %3947 = vmatmul.msk.f32.gmra.mxu1 %vm278_vm1, %v6151_v4  ;;  %v1821_v30 = vadd.f32 %v5280_v36, %v1786_v47  ;;  %v6163_v47 = vld [vmem:[#allocation26_spill] sm:$0xff] }
 0x1a5   : > { %v2071_v42 = vpop.f32.mrf.mxu2  ;;  %1853 = vst [vmem:[%s5289_s11 + $0x8] sm:$0xff] %v1821_v30 }
 0x1a6   : > { %v2283_v50 = vpop.f32.mrf.mxu3  ;;  %v1417_v62 = vpop.f32.mrf.mxu0 }
 0x1a7   : > { %v5310_v61 = vadd.f32 %v2283_v50, %v2071_v42  ;;  %v1509_v31 = vadd.f32 %v1417_v62, %v6152_v43  ;;  %v6164_v50 = vld [vmem:[#allocation21_spill] sm:$0xff] }
 0x1a8   : > { %v1695_v24 = vpop.f32.mrf.mxu1 }
 0x1a9   : > { %v1787_v53 = vadd.f32 %v1695_v24, %v1509_v31  ;;  %3882 = vmatmul.msk.f32.gmra.mxu0 %vm278_vm1, %v6153_v6  ;;  %v6165_v24 = vld [vmem:[#allocation28_spill] sm:$0xff] }
 0x1aa   : > { %4047 = vmatmul.msk.f32.gmra.mxu2 %vm278_vm1, %v6153_v6  ;;  %v6167_v6 = vld [vmem:[#allocation29_spill] sm:$0xff] }
 0x1ab   : > { %4080 = vmatmul.msk.f32.gmra.mxu3 %vm278_vm1, %v6154_v7  ;;  %3948 = vmatmul.msk.f32.gmra.mxu1 %vm278_vm1, %v6155_v35  ;;  %v1822_v45 = vadd.f32 %v5280_v36, %v1787_v53  ;;  %v6166_v53 = vld [vmem:[#allocation18_spill] sm:$0xff] }
 0x1ad   : > { %v2074_v22 = vpop.f32.mrf.mxu2  ;;  %1854 = vst [vmem:[%s5289_s11 + $0x10] sm:$0xff] %v1822_v45 }
 0x1ae   : > { %v2286_v56 = vpop.f32.mrf.mxu3  ;;  %v1420_v20 = vpop.f32.mrf.mxu0 }
 0x1af   : > { %v5323_v19 = vadd.f32 %v2286_v56, %v2074_v22  ;;  %v1510_v25 = vadd.f32 %v1420_v20, %v6156_v33  ;;  %v6168_v20 = vld [vmem:[#allocation24_spill] sm:$0xff] }
 0x1b0   : > { %v1698_v38 = vpop.f32.mrf.mxu1 }
 0x1b1   : > { %v1788_v48 = vadd.f32 %v1698_v38, %v1510_v25  ;;  %3883 = vmatmul.msk.f32.gmra.mxu0 %vm278_vm1, %v6157_v21  ;;  %v5366_v38 = vld [vmem:[%s4568_s22 + $0x100] sm:$0xff] }
 0x1b2   : > { %4048 = vmatmul.msk.f32.gmra.mxu2 %vm278_vm1, %v6157_v21  ;;  %v6169_v21 = vld [vmem:[#allocation31_spill] sm:$0xff] }
 0x1b3   : > { %4081 = vmatmul.msk.f32.gmra.mxu3 %vm278_vm1, %v6158_v12  ;;  %3949 = vmatmul.msk.f32.gmra.mxu1 %vm278_vm1, %v6159_v5  ;;  %v1823_v41 = vadd.f32 %v5280_v36, %v1788_v48  ;;  %v6170_v12 = vld [vmem:[#allocation32_spill] sm:$0xff] }
 0x1b5   : > { %v2077_v51 = vpop.f32.mrf.mxu2  ;;  %1855 = vst [vmem:[%s5289_s11 + $0x18] sm:$0xff] %v1823_v41 }
 0x1b6   : > { %v2289_v52 = vpop.f32.mrf.mxu3  ;;  %v1423_v14 = vpop.f32.mrf.mxu0 }
 0x1b7   : > { %v5336_v37 = vadd.f32 %v2289_v52, %v2077_v51  ;;  %v1511_v44 = vadd.f32 %v1423_v14, %v6160_v9  ;;  %v6171_v9 = vld [vmem:[#allocation27_spill] sm:$0xff] }
 0x1b8   : > { %v1701_v55 = vpop.f32.mrf.mxu1 }
 0x1b9   : > { %v1789_v29 = vadd.f32 %v1701_v55, %v1511_v44  ;;  %3884 = vmatmul.msk.f32.gmra.mxu0 %vm278_vm1, %v6161_v39 }
 0x1ba   : > { %4049 = vmatmul.msk.f32.gmra.mxu2 %vm278_vm1, %v6161_v39 }
 0x1bb   : > { %4082 = vmatmul.msk.f32.gmra.mxu3 %vm278_vm1, %v6162_v60  ;;  %3950 = vmatmul.msk.f32.gmra.mxu1 %vm278_vm1, %v6163_v47  ;;  %v1824_v57 = vadd.f32 %v5280_v36, %v1789_v29  ;;  %v5382_v29 = vld [vmem:[%s4568_s22 + $0x108] sm:$0xff]  ;;  %v6172_v60 = vld [vmem:[#allocation34_spill] sm:$0xff] }
 0x1bd   : > { %v2080_v58 = vpop.f32.mrf.mxu2  ;;  %1856 = vst [vmem:[%s5289_s11 + $0x40] sm:$0xff] %v1824_v57 }
 0x1be   : > { %v2292_v4 = vpop.f32.mrf.mxu3  ;;  %v1426_v42 = vpop.f32.mrf.mxu0 }
 0x1bf   : > { %v5349_v30 = vadd.f32 %v2292_v4, %v2080_v58  ;;  %v1512_v62 = vadd.f32 %v1426_v42, %v6164_v50  ;;  %v6173_v50 = vld [vmem:[#allocation30_spill] sm:$0xff] }
 0x1c0   : > { %v1704_v43 = vpop.f32.mrf.mxu1 }
 0x1c1   : > { %v1790_v31 = vadd.f32 %v1704_v43, %v1512_v62  ;;  %3885 = vmatmul.msk.f32.gmra.mxu0 %vm278_vm1, %v6165_v24 }
 0x1c2   : > { %4050 = vmatmul.msk.f32.gmra.mxu2 %vm278_vm1, %v6165_v24 }
 0x1c3   : > { %4083 = vmatmul.msk.f32.gmra.mxu3 %vm278_vm1, %v6166_v53  ;;  %3951 = vmatmul.msk.f32.gmra.mxu1 %vm278_vm1, %v6167_v6  ;;  %v1825_v7 = vadd.f32 %v5280_v36, %v1790_v31  ;;  %v5398_v31 = vld [vmem:[%s4568_s22 + $0x118] sm:$0xff]  ;;  %v6174_v53 = vld [vmem:[#allocation36_spill] sm:$0xff] }
 0x1c5   : > { %v2083_v35 = vpop.f32.mrf.mxu2  ;;  %1857 = vst [vmem:[%s5289_s11 + $0x48] sm:$0xff] %v1825_v7 }
 0x1c6   : > { %v2295_v45 = vpop.f32.mrf.mxu3  ;;  %v1429_v56 = vpop.f32.mrf.mxu0 }
 0x1c7   : > { %v5362_v22 = vadd.f32 %v2295_v45, %v2083_v35  ;;  %v1513_v33 = vadd.f32 %v1429_v56, %v6168_v20  ;;  %v6176_v20 = vld [vmem:[#allocation33_spill] sm:$0xff] }
 0x1c8   : > { %v1707_v25 = vpop.f32.mrf.mxu1 }
 0x1c9   : > { %v1791_v48 = vadd.f32 %v1707_v25, %v1513_v33  ;;  %3886 = vmatmul.msk.f32.gmra.mxu0 %vm278_vm1, %v6169_v21 }
 0x1ca   : > { %4051 = vmatmul.msk.f32.gmra.mxu2 %vm278_vm1, %v6169_v21 }
 0x1cb   : > { %4084 = vmatmul.msk.f32.gmra.mxu3 %vm278_vm1, %v5366_v38  ;;  %3952 = vmatmul.msk.f32.gmra.mxu1 %vm278_vm1, %v6170_v12  ;;  %v1826_v5 = vadd.f32 %v5280_v36, %v1791_v48  ;;  %v5414_v48 = vld [vmem:[%s4568_s22 + $0x120] sm:$0xff]  ;;  %v6177_v12 = vld [vmem:[#allocation39_spill] sm:$0xff] }
 0x1cd   : > { %v2086_v41 = vpop.f32.mrf.mxu2  ;;  %1858 = vst [vmem:[%s5289_s11 + $0x50] sm:$0xff] %v1826_v5 }
 0x1ce   : > { %v2298_v51 = vpop.f32.mrf.mxu3  ;;  %v1432_v14 = vpop.f32.mrf.mxu0 }
 0x1cf   : > { %v5378_v52 = vadd.f32 %v2298_v51, %v2086_v41  ;;  %v1514_v44 = vadd.f32 %v1432_v14, %v6171_v9 }
 0x1d0   : > { %v1710_v55 = vpop.f32.mrf.mxu1 }
 0x1d1   : > { %v1792_v39 = vadd.f32 %v1710_v55, %v1514_v44  ;;  %3887 = vmatmul.msk.f32.gmra.mxu0 %vm278_vm1, %v6172_v60  ;;  %v6178_v44 = vld [vmem:[#allocation35_spill] sm:$0xff] }
 0x1d2   : > { %4052 = vmatmul.msk.f32.gmra.mxu2 %vm278_vm1, %v6172_v60 }
 0x1d3   : > { %4085 = vmatmul.msk.f32.gmra.mxu3 %vm278_vm1, %v5382_v29  ;;  %3953 = vmatmul.msk.f32.gmra.mxu1 %vm278_vm1, %v5019_v23  ;;  %v1827_v47 = vadd.f32 %v5280_v36, %v1792_v39  ;;  %v6175_v23 = vld [vmem:[#allocation37_spill] sm:$0xff] }
 0x1d5   : > { %v2089_v57 = vpop.f32.mrf.mxu2  ;;  %1859 = vst [vmem:[%s5289_s11 + $0x58] sm:$0xff] %v1827_v47  ;;  %v6179_v47 = vld [vmem:[#allocation41_spill] sm:$0xff] }
 0x1d6   : > { %v2301_v58 = vpop.f32.mrf.mxu3  ;;  %v1435_v42 = vpop.f32.mrf.mxu0 }
 0x1d7   : > { %v5394_v4 = vadd.f32 %v2301_v58, %v2089_v57  ;;  %v1515_v62 = vadd.f32 %v1435_v42, %v6173_v50 }
 0x1d8   : > { %v1713_v43 = vpop.f32.mrf.mxu1 }
 0x1d9   : > { %v1793_v24 = vadd.f32 %v1713_v43, %v1515_v62  ;;  %3888 = vmatmul.msk.f32.gmra.mxu0 %vm278_vm1, %v6174_v53  ;;  %v6180_v43 = vld [vmem:[#allocation38_spill] sm:$0xff] }
 0x1da   : > { %4053 = vmatmul.msk.f32.gmra.mxu2 %vm278_vm1, %v6174_v53 }
 0x1db   : > { %4086 = vmatmul.msk.f32.gmra.mxu3 %vm278_vm1, %v5398_v31  ;;  %3954 = vmatmul.msk.f32.gmra.mxu1 %vm278_vm1, %v6175_v23  ;;  %v1828_v6 = vadd.f32 %v5280_v36, %v1793_v24  ;;  %v5446_v23 = vld [vmem:[%s4568_s22 + $0x130] sm:$0xff] }
 0x1dd   : > { %v2092_v7 = vpop.f32.mrf.mxu2  ;;  %1860 = vst [vmem:[%s5289_s11 + $0x80] sm:$0xff] %v1828_v6 }
 0x1de   : > { %v2304_v35 = vpop.f32.mrf.mxu3  ;;  %v1438_v56 = vpop.f32.mrf.mxu0 }
 0x1df   : > { %v5410_v45 = vadd.f32 %v2304_v35, %v2092_v7  ;;  %v1516_v33 = vadd.f32 %v1438_v56, %v6176_v20 }
 0x1e0   : > { %v1716_v25 = vpop.f32.mrf.mxu1 }
 0x1e1   : > { %v1794_v21 = vadd.f32 %v1716_v25, %v1516_v33  ;;  %3889 = vmatmul.msk.f32.gmra.mxu0 %vm278_vm1, %v5061_v17  ;;  %v5461_v33 = vld [vmem:[%s4568_s22 + $0x141] sm:$0xff]  ;;  %v6181_v25 = vld [vmem:[#allocation40_spill] sm:$0xff] }
 0x1e2   : > { %4054 = vmatmul.msk.f32.gmra.mxu2 %vm278_vm1, %v5061_v17  ;;  %v5430_v17 = vld [vmem:[%s4568_s22 + $0x128] sm:$0xff] }
 0x1e3   : > { %4087 = vmatmul.msk.f32.gmra.mxu3 %vm278_vm1, %v5414_v48  ;;  %3955 = vmatmul.msk.f32.gmra.mxu1 %vm278_vm1, %v6177_v12  ;;  %v1829_v5 = vadd.f32 %v5280_v36, %v1794_v21  ;;  %v5465_v12 = vld [vmem:[%s4568_s22 + $0x140] sm:$0xff] }
 0x1e5   : > { %v2095_v41 = vpop.f32.mrf.mxu2  ;;  %1861 = vst [vmem:[%s5289_s11 + $0x88] sm:$0xff] %v1829_v5  ;;  %v5468_v5 = vld [vmem:[%s4568_s22 + $0x142] sm:$0xff] }
 0x1e6   : > { %v2307_v51 = vpop.f32.mrf.mxu3  ;;  %v1441_v9 = vpop.f32.mrf.mxu0 }
 0x1e7   : > { %v5426_v14 = vadd.f32 %v2307_v51, %v2095_v41  ;;  %v1517_v55 = vadd.f32 %v1441_v9, %v6178_v44 }
 0x1e8   : > { %v1719_v39 = vpop.f32.mrf.mxu1 }
 0x1e9   : > { %v1795_v60 = vadd.f32 %v1719_v39, %v1517_v55  ;;  %3890 = vmatmul.msk.f32.gmra.mxu0 %vm278_vm1, %v6179_v47  ;;  %v5483_v39 = vld [vmem:[%s4568_s22 + $0x149] sm:$0xff] }
 0x1ea   : > { %4055 = vmatmul.msk.f32.gmra.mxu2 %vm278_vm1, %v6179_v47 }
 0x1eb   : > { %4088 = vmatmul.msk.f32.gmra.mxu3 %vm278_vm1, %v5430_v17  ;;  %3956 = vmatmul.msk.f32.gmra.mxu1 %vm278_vm1, %v5084_v13  ;;  %v1830_v57 = vadd.f32 %v5280_v36, %v1795_v60  ;;  %v6182_v60 = vld [vmem:[#allocation42_spill] sm:$0xff] }
 0x1ed   : > { %v2098_v58 = vpop.f32.mrf.mxu2  ;;  %1862 = vst [vmem:[%s5289_s11 + $0x90] sm:$0xff] %v1830_v57 }
 0x1ee   : > { %v2310_v42 = vpop.f32.mrf.mxu3  ;;  %v1444_v62 = vpop.f32.mrf.mxu0 }
 0x1ef   : > { %v5442_v50 = vadd.f32 %v2310_v42, %v2098_v58  ;;  %v1518_v24 = vadd.f32 %v1444_v62, %v6180_v43  ;;  %v5487_v58 = vld [vmem:[%s4568_s22 + $0x148] sm:$0xff] }
 0x1f0   : > { %v1722_v53 = vpop.f32.mrf.mxu1  ;;  %v5490_v42 = vld [vmem:[%s4568_s22 + $0x14a] sm:$0xff] }
 0x1f1   : > { %v1796_v6 = vadd.f32 %v1722_v53, %v1518_v24  ;;  %3891 = vmatmul.msk.f32.gmra.mxu0 %vm278_vm1, %v5097_v1 }
 0x1f2   : > { %4056 = vmatmul.msk.f32.gmra.mxu2 %vm278_vm1, %v5097_v1 }
 0x1f3   : > { %4089 = vmatmul.msk.f32.gmra.mxu3 %vm278_vm1, %v5446_v23  ;;  %3957 = vmatmul.msk.f32.gmra.mxu1 %vm278_vm1, %v5100_v2  ;;  %v1831_v13 = vadd.f32 %v5280_v36, %v1796_v6 }
 0x1f5   : > { %v2101_v7 = vpop.f32.mrf.mxu2  ;;  %1863 = vst [vmem:[%s5289_s11 + $0x98] sm:$0xff] %v1831_v13 }
 0x1f6   : > { %v2313_v35 = vpop.f32.mrf.mxu3  ;;  %v1447_v20 = vpop.f32.mrf.mxu0 }
 0x1f7   : > { %v5458_v56 = vadd.f32 %v2313_v35, %v2101_v7  ;;  %v1519_v1 = vadd.f32 %v1447_v20, %v6181_v25  ;;  %v5505_v7 = vld [vmem:[%s4568_s22 + $0x151] sm:$0xff] }
 0x1f8   : > { %v1725_v21 = vpop.f32.mrf.mxu1  ;;  %v5509_v25 = vld [vmem:[%s4568_s22 + $0x150] sm:$0xff] }
 0x1f9   : > { %v1797_v2 = vadd.f32 %v1725_v21, %v1519_v1  ;;  %3892 = vmatmul.msk.f32.gmra.mxu0 %vm278_vm1, %v5461_v33  ;;  %v5512_v1 = vld [vmem:[%s4568_s22 + $0x152] sm:$0xff] }
 0x1fa   : > { %4057 = vmatmul.msk.f32.gmra.mxu2 %vm278_vm1, %v5461_v33 }
 0x1fb   : > { %4090 = vmatmul.msk.f32.gmra.mxu3 %vm278_vm1, %v5465_v12  ;;  %3958 = vmatmul.msk.f32.gmra.mxu1 %vm278_vm1, %v5468_v5  ;;  %v1832_v41 = vadd.f32 %v5280_v36, %v1797_v2 }
 0x1fd   : > { %v2104_v51 = vpop.f32.mrf.mxu2  ;;  %1864 = vst [vmem:[%s5289_s11 + $0xc0] sm:$0xff] %v1832_v41 }
 0x1fe   : > { %v2316_v9 = vpop.f32.mrf.mxu3  ;;  %v1450_v55 = vpop.f32.mrf.mxu0 }
 0x1ff   : > { %v5480_v44 = vadd.f32 %v2316_v9, %v2104_v51  ;;  %v1520_v47 = vadd.f32 %v1450_v55, %v6182_v60  ;;  %v5527_v55 = vld [vmem:[%s4568_s22 + $0x159] sm:$0xff] }
 0x200   : > { %v1728_v57 = vpop.f32.mrf.mxu1 }
 0x201   : > { %v1798_v62 = vadd.f32 %v1728_v57, %v1520_v47  ;;  %3893 = vmatmul.msk.f32.gmra.mxu0 %vm278_vm1, %v5483_v39  ;;  %v5531_v57 = vld [vmem:[%s4568_s22 + $0x158] sm:$0xff] }
 0x202   : > { %4058 = vmatmul.msk.f32.gmra.mxu2 %vm278_vm1, %v5483_v39 }
 0x203   : > { %4091 = vmatmul.msk.f32.gmra.mxu3 %vm278_vm1, %v5487_v58  ;;  %3959 = vmatmul.msk.f32.gmra.mxu1 %vm278_vm1, %v5490_v42  ;;  %v1833_v43 = vadd.f32 %v5280_v36, %v1798_v62  ;;  %v5534_v62 = vld [vmem:[%s4568_s22 + $0x15a] sm:$0xff] }
 0x205   : > { %v2107_v24 = vpop.f32.mrf.mxu2  ;;  %1865 = vst [vmem:[%s5289_s11 + $0xc8] sm:$0xff] %v1833_v43 }
 0x206   : > { %v2319_v53 = vpop.f32.mrf.mxu3  ;;  %v1453_v13 = vpop.f32.mrf.mxu0 }
 0x207   : > { %v5502_v6 = vadd.f32 %v2319_v53, %v2107_v24  ;;  %v1521_v35 = vadd.f32 %v1453_v13, %v5102_v0 }
 0x208   : > { %v1731_v20 = vpop.f32.mrf.mxu1 }
 0x209   : > { %v1799_v21 = vadd.f32 %v1731_v20, %v1521_v35  ;;  %3894 = vmatmul.msk.f32.gmra.mxu0 %vm278_vm1, %v5505_v7  ;;  %v4094_v20 = vld [vmem:[%s4568_s22 + $0x2a] sm:$0xff] }
 0x20a   : > { %4059 = vmatmul.msk.f32.gmra.mxu2 %vm278_vm1, %v5505_v7 }
 0x20b   : > { %4092 = vmatmul.msk.f32.gmra.mxu3 %vm278_vm1, %v5509_v25  ;;  %3960 = vmatmul.msk.f32.gmra.mxu1 %vm278_vm1, %v5512_v1  ;;  %v1834_v0 = vadd.f32 %v5280_v36, %v1799_v21  ;;  %v4226_v21 = vld [vmem:[%s4568_s22 + $0x51] sm:$0xff] }
 0x20d   : > { %v2110_v2 = vpop.f32.mrf.mxu2  ;;  %1866 = vst [vmem:[%s5289_s11 + $0xd0] sm:$0xff] %v1834_v0 }
 0x20e   : > { %v2322_v41 = vpop.f32.mrf.mxu3  ;;  %v1456_v9 = vpop.f32.mrf.mxu0 }
 0x20f   : > { %v5524_v51 = vadd.f32 %v2322_v41, %v2110_v2  ;;  %v1522_v60 = vadd.f32 %v1456_v9, %v5112_v63  ;;  %v4160_v41 = vld [vmem:[%s4568_s22 + $0x50] sm:$0xff] }
 0x210   : > { %v1734_v47 = vpop.f32.mrf.mxu1  ;;  %v5553_v9 = vld [vmem:[%s4568_s22 + $0x52] sm:$0xff] }
 0x211   : > { %v1800_v43 = vadd.f32 %v1734_v47, %v1522_v60  ;;  %3895 = vmatmul.msk.f32.gmra.mxu0 %vm278_vm1, %v5527_v55 }
 0x212   : > { %4060 = vmatmul.msk.f32.gmra.mxu2 %vm278_vm1, %v5527_v55 }
 0x213   : > { %4093 = vmatmul.msk.f32.gmra.mxu3 %vm278_vm1, %v5531_v57  ;;  %3961 = vmatmul.msk.f32.gmra.mxu1 %vm278_vm1, %v5534_v62  ;;  %v1835_v63 = vadd.f32 %v5280_v36, %v1800_v43 }
 0x215   : > { %v2113_v24 = vpop.f32.mrf.mxu2  ;;  %1867 = vst [vmem:[%s5289_s11 + $0xd8] sm:$0xff] %v1835_v63 }
 0x216   : > { %v2325_v53 = vpop.f32.mrf.mxu3  ;;  %v1459_v35 = vpop.f32.mrf.mxu0 }
 0x217   : > { %v5546_v13 = vadd.f32 %v2325_v53, %v2113_v24  ;;  %v1523_v0 = vadd.f32 %v1459_v35, %v5122_v8  ;;  %v4095_v53 = vld [vmem:[%s4568_s22 + $0x32] sm:$0xff] }
 0x218   : > { %v1737_v2 = vpop.f32.mrf.mxu1  ;;  %v4227_v35 = vld [vmem:[%s4568_s22 + $0x59] sm:$0xff] }
 0x219   : > { %v1801_v60 = vadd.f32 %v1737_v2, %v1523_v0  ;;  %4128 = vmatmul.msk.f32.vlgmr.msra.gmra.mxu0 %vm278_vm1, %v4094_v20  ;;  %v4161_v0 = vld [vmem:[%s4568_s22 + $0x58] sm:$0xff] }
 0x21a   : > { %4260 = vmatmul.msk.f32.vlgmr.msra.gmra.mxu2 %vm278_vm1, %v4226_v21  ;;  %v5569_v2 = vld [vmem:[%s4568_s22 + $0x5a] sm:$0xff] }
 0x21b   : > { %4194 = vmatmul.msk.f32.vlgmr.msra.gmra.mxu1 %vm278_vm1, %v4160_v41  ;;  %4326 = vmatmul.msk.f32.vlgmr.msra.gmra.mxu3 %vm278_vm1, %v5553_v9  ;;  %v1836_v47 = vadd.f32 %v5280_v36, %v1801_v60 }
 0x21d   : > { %v2116_v8 = vpop.f32.mrf.mxu2  ;;  %1868 = vst [vmem:[%s5289_s11 + $0x100] sm:$0xff] %v1836_v47 }
 0x21e   : > { %v2328_v43 = vpop.f32.mrf.mxu3  ;;  %v1462_v24 = vpop.f32.mrf.mxu0 }
 0x21f   : > { %v5562_v63 = vadd.f32 %v2328_v43, %v2116_v8  ;;  %v1524_v20 = vadd.f32 %v1462_v24, %v5132_v15  ;;  %v4096_v24 = vld [vmem:[%s4568_s22 + $0x3a] sm:$0xff] }
 0x220   : > { %v1740_v21 = vpop.f32.mrf.mxu1 }
 0x221   : > { %6183 = vst [vmem:[#allocation2_spill] sm:$0xff] %v5562_v63  ;;  %v1802_v41 = vadd.f32 %v1740_v21, %v1524_v20  ;;  %4129 = vmatmul.msk.f32.gmra.mxu0 %vm278_vm1, %v4095_v53  ;;  %v4228_v20 = vld [vmem:[%s4568_s22 + $0x61] sm:$0xff] }
 0x222   : > { %4261 = vmatmul.msk.f32.gmra.mxu2 %vm278_vm1, %v4227_v35  ;;  %v4162_v21 = vld [vmem:[%s4568_s22 + $0x60] sm:$0xff] }
 0x223   : > { %4195 = vmatmul.msk.f32.gmra.mxu1 %vm278_vm1, %v4161_v0  ;;  %4327 = vmatmul.msk.f32.gmra.mxu3 %vm278_vm1, %v5569_v2  ;;  %v1837_v60 = vadd.f32 %v5280_v36, %v1802_v41  ;;  %v5585_v0 = vld [vmem:[%s4568_s22 + $0x62] sm:$0xff] }
 0x225   : > { %v2119_v15 = vpop.f32.mrf.mxu2  ;;  %1869 = vst [vmem:[%s5289_s11 + $0x108] sm:$0xff] %v1837_v60 }
 0x226   : > { %v2331_v47 = vpop.f32.mrf.mxu3  ;;  %v1465_v43 = vpop.f32.mrf.mxu0 }
 0x227   : > { %v5578_v8 = vadd.f32 %v2331_v47, %v2119_v15  ;;  %v1525_v53 = vadd.f32 %v1465_v43, %v5142_v3  ;;  %v4097_v43 = vld [vmem:[%s4568_s22 + $0x42] sm:$0xff] }
 0x228   : > { %v1743_v35 = vpop.f32.mrf.mxu1 }
 0x229   : > { %6184 = vst [vmem:[#allocation8_spill] sm:$0xff] %v5578_v8  ;;  %v1803_v63 = vadd.f32 %v1743_v35, %v1525_v53  ;;  %4130 = vmatmul.msk.f32.gmra.mxu0 %vm278_vm1, %v4096_v24  ;;  %v4229_v53 = vld [vmem:[%s4568_s22 + $0x69] sm:$0xff] }
 0x22a   : > { %4262 = vmatmul.msk.f32.gmra.mxu2 %vm278_vm1, %v4228_v20  ;;  %v4163_v35 = vld [vmem:[%s4568_s22 + $0x68] sm:$0xff] }
 0x22b   : > { %4196 = vmatmul.msk.f32.gmra.mxu1 %vm278_vm1, %v4162_v21  ;;  %4328 = vmatmul.msk.f32.gmra.mxu3 %vm278_vm1, %v5585_v0  ;;  %v1838_v41 = vadd.f32 %v5280_v36, %v1803_v63  ;;  %v5601_v21 = vld [vmem:[%s4568_s22 + $0x6a] sm:$0xff] }
 0x22d   : > { %v2122_v3 = vpop.f32.mrf.mxu2  ;;  %1870 = vst [vmem:[%s5289_s11 + $0x110] sm:$0xff] %v1838_v41 }
 0x22e   : > { %v2334_v60 = vpop.f32.mrf.mxu3  ;;  %v1468_v47 = vpop.f32.mrf.mxu0 }
 0x22f   : > { %v5594_v15 = vadd.f32 %v2334_v60, %v2122_v3  ;;  %v1526_v24 = vadd.f32 %v1468_v47, %v5152_v10  ;;  %v4230_v47 = vld [vmem:[%s4568_s22 + $0x79] sm:$0xff] }
 0x230   : > { %v1746_v20 = vpop.f32.mrf.mxu1 }
 0x231   : > { %v1804_v8 = vadd.f32 %v1746_v20, %v1526_v24  ;;  %4131 = vmatmul.msk.f32.gmra.mxu0 %vm278_vm1, %v4097_v43  ;;  %v5616_v20 = vld [vmem:[%s4568_s22 + $0x7a] sm:$0xff] }
 0x232   : > { %4263 = vmatmul.msk.f32.gmra.mxu2 %vm278_vm1, %v4229_v53  ;;  %v4164_v53 = vld [vmem:[%s4568_s22 + $0x78] sm:$0xff] }
 0x233   : > { %4197 = vmatmul.msk.f32.gmra.mxu1 %vm278_vm1, %v4163_v35  ;;  %4329 = vmatmul.msk.f32.gmra.mxu3 %vm278_vm1, %v5601_v21  ;;  %v1839_v63 = vadd.f32 %v5280_v36, %v1804_v8 }
 0x235   : > { %v2125_v41 = vpop.f32.mrf.mxu2  ;;  %1871 = vst [vmem:[%s5289_s11 + $0x118] sm:$0xff] %v1839_v63 }
 0x236   : > { %v2337_v10 = vpop.f32.mrf.mxu3  ;;  %v1471_v60 = vpop.f32.mrf.mxu0 }
 0x237   : > { %v5610_v3 = vadd.f32 %v2337_v10, %v2125_v41  ;;  %v1527_v43 = vadd.f32 %v1471_v60, %v5162_v59  ;;  %v4231_v60 = vld [vmem:[%s4568_s22 + $0x81] sm:$0xff] }
 0x238   : > { %v1749_v24 = vpop.f32.mrf.mxu1 }
 0x239   : > { %v1805_v35 = vadd.f32 %v1749_v24, %v1527_v43  ;;  %4132 = vmatmul.msk.f32.gmra.mxu0 %vm278_vm1, %v5553_v9  ;;  %v5632_v24 = vld [vmem:[%s4568_s22 + $0x82] sm:$0xff] }
 0x23a   : > { %4264 = vmatmul.msk.f32.gmra.mxu2 %vm278_vm1, %v4230_v47  ;;  %v4165_v47 = vld [vmem:[%s4568_s22 + $0x80] sm:$0xff] }
 0x23b   : > { %4198 = vmatmul.msk.f32.gmra.mxu1 %vm278_vm1, %v4164_v53  ;;  %4330 = vmatmul.msk.f32.gmra.mxu3 %vm278_vm1, %v5616_v20  ;;  %v1840_v8 = vadd.f32 %v5280_v36, %v1805_v35 }
 0x23d   : > { %v2128_v59 = vpop.f32.mrf.mxu2  ;;  %1872 = vst [vmem:[%s5289_s11 + $0x140] sm:$0xff] %v1840_v8 }
 0x23e   : > { %v2340_v63 = vpop.f32.mrf.mxu3  ;;  %v1474_v10 = vpop.f32.mrf.mxu0 }
 0x23f   : > { %v5626_v41 = vadd.f32 %v2340_v63, %v2128_v59  ;;  %v1528_v9 = vadd.f32 %v1474_v10, %v5172_v28  ;;  %v4232_v10 = vld [vmem:[%s4568_s22 + $0x89] sm:$0xff] }
 0x240   : > { %v1752_v43 = vpop.f32.mrf.mxu1 }
 0x241   : > { %v1806_v53 = vadd.f32 %v1752_v43, %v1528_v9  ;;  %4133 = vmatmul.msk.f32.gmra.mxu0 %vm278_vm1, %v5569_v2  ;;  %v5648_v43 = vld [vmem:[%s4568_s22 + $0x8a] sm:$0xff] }
 0x242   : > { %4265 = vmatmul.msk.f32.gmra.mxu2 %vm278_vm1, %v4231_v60  ;;  %v4166_v60 = vld [vmem:[%s4568_s22 + $0x88] sm:$0xff] }
 0x243   : > { %4199 = vmatmul.msk.f32.gmra.mxu1 %vm278_vm1, %v4165_v47  ;;  %4331 = vmatmul.msk.f32.gmra.mxu3 %vm278_vm1, %v5632_v24  ;;  %v1841_v35 = vadd.f32 %v5280_v36, %v1806_v53 }
 0x245   : > { %v2131_v28 = vpop.f32.mrf.mxu2  ;;  %1873 = vst [vmem:[%s5289_s11 + $0x148] sm:$0xff] %v1841_v35 }
 0x246   : > { %v2343_v8 = vpop.f32.mrf.mxu3  ;;  %v1477_v63 = vpop.f32.mrf.mxu0 }
 0x247   : > { %v5642_v59 = vadd.f32 %v2343_v8, %v2131_v28  ;;  %v1529_v2 = vadd.f32 %v1477_v63, %v5182_v18  ;;  %v4233_v63 = vld [vmem:[%s4568_s22 + $0x91] sm:$0xff] }
 0x248   : > { %v1755_v9 = vpop.f32.mrf.mxu1 }
 0x249   : > { %v1807_v47 = vadd.f32 %v1755_v9, %v1529_v2  ;;  %4134 = vmatmul.msk.f32.gmra.mxu0 %vm278_vm1, %v5585_v0  ;;  %v5664_v9 = vld [vmem:[%s4568_s22 + $0x92] sm:$0xff] }
 0x24a   : > { %4266 = vmatmul.msk.f32.gmra.mxu2 %vm278_vm1, %v4232_v10  ;;  %v4167_v10 = vld [vmem:[%s4568_s22 + $0x90] sm:$0xff] }
 0x24b   : > { %4200 = vmatmul.msk.f32.gmra.mxu1 %vm278_vm1, %v4166_v60  ;;  %4332 = vmatmul.msk.f32.gmra.mxu3 %vm278_vm1, %v5648_v43  ;;  %v1842_v53 = vadd.f32 %v5280_v36, %v1807_v47 }
 0x24d   : > { %v2134_v18 = vpop.f32.mrf.mxu2  ;;  %1874 = vst [vmem:[%s5289_s11 + $0x150] sm:$0xff] %v1842_v53 }
 0x24e   : > { %v2346_v35 = vpop.f32.mrf.mxu3  ;;  %v1480_v8 = vpop.f32.mrf.mxu0 }
 0x24f   : > { %v5658_v28 = vadd.f32 %v2346_v35, %v2134_v18  ;;  %v1530_v0 = vadd.f32 %v1480_v8, %v5192_v16  ;;  %v4234_v8 = vld [vmem:[%s4568_s22 + $0xa1] sm:$0xff] }
 0x250   : > { %v1758_v2 = vpop.f32.mrf.mxu1 }
 0x251   : > { %v1808_v60 = vadd.f32 %v1758_v2, %v1530_v0  ;;  %4135 = vmatmul.msk.f32.gmra.mxu0 %vm278_vm1, %v5601_v21  ;;  %v5680_v2 = vld [vmem:[%s4568_s22 + $0xa2] sm:$0xff] }
 0x252   : > { %4267 = vmatmul.msk.f32.gmra.mxu2 %vm278_vm1, %v4233_v63  ;;  %v4168_v63 = vld [vmem:[%s4568_s22 + $0xa0] sm:$0xff] }
 0x253   : > { %4201 = vmatmul.msk.f32.gmra.mxu1 %vm278_vm1, %v4167_v10  ;;  %4333 = vmatmul.msk.f32.gmra.mxu3 %vm278_vm1, %v5664_v9  ;;  %v1843_v47 = vadd.f32 %v5280_v36, %v1808_v60 }
 0x255   : > { %v2137_v16 = vpop.f32.mrf.mxu2  ;;  %1875 = vst [vmem:[%s5289_s11 + $0x158] sm:$0xff] %v1843_v47 }
 0x256   : > { %v2349_v53 = vpop.f32.mrf.mxu3  ;;  %v1483_v35 = vpop.f32.mrf.mxu0 }
 0x257   : > { %v5674_v18 = vadd.f32 %v2349_v53, %v2137_v16  ;;  %v1531_v21 = vadd.f32 %v1483_v35, %v5202_v34  ;;  %v4235_v35 = vld [vmem:[%s4568_s22 + $0xa9] sm:$0xff] }
 0x258   : > { %v1761_v0 = vpop.f32.mrf.mxu1 }
 0x259   : > { %v1809_v10 = vadd.f32 %v1761_v0, %v1531_v21  ;;  %4136 = vmatmul.msk.f32.gmra.mxu0 %vm278_vm1, %v5616_v20  ;;  %v5696_v0 = vld [vmem:[%s4568_s22 + $0xaa] sm:$0xff] }
 0x25a   : > { %4268 = vmatmul.msk.f32.gmra.mxu2 %vm278_vm1, %v4234_v8  ;;  %v4169_v8 = vld [vmem:[%s4568_s22 + $0xa8] sm:$0xff] }
 0x25b   : > { %4202 = vmatmul.msk.f32.gmra.mxu1 %vm278_vm1, %v4168_v63  ;;  %4334 = vmatmul.msk.f32.gmra.mxu3 %vm278_vm1, %v5680_v2  ;;  %v1844_v60 = vadd.f32 %v5280_v36, %v1809_v10 }
 0x25d   : > { %v2140_v34 = vpop.f32.mrf.mxu2  ;;  %1876 = vst [vmem:[%s5289_s11 + $0x180] sm:$0xff] %v1844_v60 }
 0x25e   : > { %v2352_v47 = vpop.f32.mrf.mxu3  ;;  %v1486_v53 = vpop.f32.mrf.mxu0 }
 0x25f   : > { %v5690_v16 = vadd.f32 %v2352_v47, %v2140_v34  ;;  %v1532_v20 = vadd.f32 %v1486_v53, %v5212_v26  ;;  %v4236_v53 = vld [vmem:[%s4568_s22 + $0xb1] sm:$0xff] }
 0x260   : > { %v1764_v21 = vpop.f32.mrf.mxu1 }
 0x261   : > { %v1810_v63 = vadd.f32 %v1764_v21, %v1532_v20  ;;  %4137 = vmatmul.msk.f32.gmra.mxu0 %vm278_vm1, %v5632_v24  ;;  %v5712_v21 = vld [vmem:[%s4568_s22 + $0xb2] sm:$0xff] }
 0x262   : > { %4269 = vmatmul.msk.f32.gmra.mxu2 %vm278_vm1, %v4235_v35  ;;  %v4170_v35 = vld [vmem:[%s4568_s22 + $0xb0] sm:$0xff] }
 0x263   : > { %4203 = vmatmul.msk.f32.gmra.mxu1 %vm278_vm1, %v4169_v8  ;;  %4335 = vmatmul.msk.f32.gmra.mxu3 %vm278_vm1, %v5696_v0  ;;  %v1845_v10 = vadd.f32 %v5280_v36, %v1810_v63 }
 0x265   : > { %v2143_v26 = vpop.f32.mrf.mxu2  ;;  %1877 = vst [vmem:[%s5289_s11 + $0x188] sm:$0xff] %v1845_v10 }
 0x266   : > { %v2355_v60 = vpop.f32.mrf.mxu3  ;;  %v1489_v47 = vpop.f32.mrf.mxu0 }
 0x267   : > { %v5706_v34 = vadd.f32 %v2355_v60, %v2143_v26  ;;  %v1533_v24 = vadd.f32 %v1489_v47, %v5222_v27  ;;  %v4237_v47 = vld [vmem:[%s4568_s22 + $0xb9] sm:$0xff] }
 0x268   : > { %v1767_v20 = vpop.f32.mrf.mxu1 }
 0x269   : > { %v1811_v8 = vadd.f32 %v1767_v20, %v1533_v24  ;;  %4138 = vmatmul.msk.f32.gmra.mxu0 %vm278_vm1, %v5648_v43  ;;  %v5728_v20 = vld [vmem:[%s4568_s22 + $0xba] sm:$0xff] }
 0x26a   : > { %4270 = vmatmul.msk.f32.gmra.mxu2 %vm278_vm1, %v4236_v53  ;;  %v4171_v53 = vld [vmem:[%s4568_s22 + $0xb8] sm:$0xff] }
 0x26b   : > { %4204 = vmatmul.msk.f32.gmra.mxu1 %vm278_vm1, %v4170_v35  ;;  %4336 = vmatmul.msk.f32.gmra.mxu3 %vm278_vm1, %v5712_v21  ;;  %v1846_v63 = vadd.f32 %v5280_v36, %v1811_v8 }
 0x26d   : > { %v2146_v27 = vpop.f32.mrf.mxu2  ;;  %1878 = vst [vmem:[%s5289_s11 + $0x190] sm:$0xff] %v1846_v63 }
 0x26e   : > { %v2358_v10 = vpop.f32.mrf.mxu3  ;;  %v1492_v60 = vpop.f32.mrf.mxu0 }
 0x26f   : > { %v5722_v26 = vadd.f32 %v2358_v10, %v2146_v27  ;;  %v1534_v43 = vadd.f32 %v1492_v60, %v5232_v40  ;;  %v4238_v60 = vld [vmem:[%s4568_s22 + $0xc9] sm:$0xff] }
 0x270   : > { %v1770_v24 = vpop.f32.mrf.mxu1 }
 0x271   : > { %v1812_v35 = vadd.f32 %v1770_v24, %v1534_v43  ;;  %4139 = vmatmul.msk.f32.gmra.mxu0 %vm278_vm1, %v5664_v9  ;;  %v5744_v24 = vld [vmem:[%s4568_s22 + $0xca] sm:$0xff] }
 0x272   : > { %4271 = vmatmul.msk.f32.gmra.mxu2 %vm278_vm1, %v4237_v47  ;;  %v4172_v47 = vld [vmem:[%s4568_s22 + $0xc8] sm:$0xff] }
 0x273   : > { %4205 = vmatmul.msk.f32.gmra.mxu1 %vm278_vm1, %v4171_v53  ;;  %4337 = vmatmul.msk.f32.gmra.mxu3 %vm278_vm1, %v5728_v20  ;;  %v1847_v8 = vadd.f32 %v5280_v36, %v1812_v35 }
 0x275   : > { %v2149_v40 = vpop.f32.mrf.mxu2  ;;  %1879 = vst [vmem:[%s5289_s11 + $0x198] sm:$0xff] %v1847_v8 }
 0x276   : > { %v2361_v63 = vpop.f32.mrf.mxu3  ;;  %v1495_v10 = vpop.f32.mrf.mxu0 }
 0x277   : > { %v5738_v27 = vadd.f32 %v2361_v63, %v2149_v40  ;;  %v1535_v9 = vadd.f32 %v1495_v10, %v5242_v32  ;;  %v4239_v10 = vld [vmem:[%s4568_s22 + $0xd1] sm:$0xff] }
 0x278   : > { %v1773_v43 = vpop.f32.mrf.mxu1 }
 0x279   : > { %v1813_v53 = vadd.f32 %v1773_v43, %v1535_v9  ;;  %4140 = vmatmul.msk.f32.gmra.mxu0 %vm278_vm1, %v5680_v2  ;;  %v5760_v43 = vld [vmem:[%s4568_s22 + $0xd2] sm:$0xff] }
 0x27a   : > { %4272 = vmatmul.msk.f32.gmra.mxu2 %vm278_vm1, %v4238_v60  ;;  %v4173_v60 = vld [vmem:[%s4568_s22 + $0xd0] sm:$0xff] }
 0x27b   : > { %4206 = vmatmul.msk.f32.gmra.mxu1 %vm278_vm1, %v4172_v47  ;;  %4338 = vmatmul.msk.f32.gmra.mxu3 %vm278_vm1, %v5744_v24  ;;  %v1848_v35 = vadd.f32 %v5280_v36, %v1813_v53 }
 0x27d   : > { %v2152_v32 = vpop.f32.mrf.mxu2  ;;  %1880 = vst [vmem:[%s5289_s11 + $0x1c0] sm:$0xff] %v1848_v35 }
 0x27e   : > { %v2364_v8 = vpop.f32.mrf.mxu3  ;;  %v1498_v63 = vpop.f32.mrf.mxu0 }
 0x27f   : > { %v5754_v40 = vadd.f32 %v2364_v8, %v2152_v32  ;;  %v1536_v2 = vadd.f32 %v1498_v63, %v5253_v11  ;;  %v4240_v63 = vld [vmem:[%s4568_s22 + $0xd9] sm:$0xff] }
 0x280   : > { %v1776_v9 = vpop.f32.mrf.mxu1 }
 0x281   : > { %v1814_v47 = vadd.f32 %v1776_v9, %v1536_v2  ;;  %4141 = vmatmul.msk.f32.gmra.mxu0 %vm278_vm1, %v5696_v0  ;;  %v5776_v9 = vld [vmem:[%s4568_s22 + $0xda] sm:$0xff] }
 0x282   : > { %4273 = vmatmul.msk.f32.gmra.mxu2 %vm278_vm1, %v4239_v10  ;;  %v4174_v10 = vld [vmem:[%s4568_s22 + $0xd8] sm:$0xff] }
 0x283   : > { %4207 = vmatmul.msk.f32.gmra.mxu1 %vm278_vm1, %v4173_v60  ;;  %4339 = vmatmul.msk.f32.gmra.mxu3 %vm278_vm1, %v5760_v43  ;;  %v1849_v53 = vadd.f32 %v5280_v36, %v1814_v47 }
 0x285   : > { %v2155_v11 = vpop.f32.mrf.mxu2  ;;  %1881 = vst [vmem:[%s5289_s11 + $0x1c8] sm:$0xff] %v1849_v53 }
 0x286   : > { %v2367_v35 = vpop.f32.mrf.mxu3  ;;  %v1501_v8 = vpop.f32.mrf.mxu0 }
 0x287   : > { %v5770_v32 = vadd.f32 %v2367_v35, %v2155_v11  ;;  %v1537_v0 = vadd.f32 %v1501_v8, %v5263_v46  ;;  %v4241_v8 = vld [vmem:[%s4568_s22 + $0xe1] sm:$0xff] }
 0x288   : > { %v1779_v2 = vpop.f32.mrf.mxu1 }
 0x289   : > { %6185 = vst [vmem:[#allocation4_spill] sm:$0xff] %v5770_v32  ;;  %v1815_v60 = vadd.f32 %v1779_v2, %v1537_v0  ;;  %4142 = vmatmul.msk.f32.gmra.mxu0 %vm278_vm1, %v5712_v21  ;;  %v5792_v2 = vld [vmem:[%s4568_s22 + $0xe2] sm:$0xff]  ;;  %v5820_v32 = vld [vmem:[%s4568_s22 + $0xfa] sm:$0xff] }
 0x28a   : > { %4274 = vmatmul.msk.f32.gmra.mxu2 %vm278_vm1, %v4240_v63  ;;  %v4175_v63 = vld [vmem:[%s4568_s22 + $0xe0] sm:$0xff] }
 0x28b   : > { %4208 = vmatmul.msk.f32.gmra.mxu1 %vm278_vm1, %v4174_v10  ;;  %4340 = vmatmul.msk.f32.gmra.mxu3 %vm278_vm1, %v5776_v9  ;;  %v1850_v47 = vadd.f32 %v5280_v36, %v1815_v60 }
 0x28d   : > { %v2158_v46 = vpop.f32.mrf.mxu2  ;;  %1882 = vst [vmem:[%s5289_s11 + $0x1d0] sm:$0xff] %v1850_v47 }
 0x28e   : > { %v2370_v53 = vpop.f32.mrf.mxu3  ;;  %v1504_v35 = vpop.f32.mrf.mxu0 }
 0x28f   : > { %v5786_v11 = vadd.f32 %v2370_v53, %v2158_v46  ;;  %v1538_v21 = vadd.f32 %v1504_v35, %v5274_v49  ;;  %v4242_v35 = vld [vmem:[%s4568_s22 + $0xf1] sm:$0xff] }
 0x290   : > { %v1782_v0 = vpop.f32.mrf.mxu1 }
 0x291   : > { %6186 = vst [vmem:[#allocation11_spill] sm:$0xff] %v5786_v11  ;;  %v1816_v10 = vadd.f32 %v1782_v0, %v1538_v21  ;;  %4143 = vmatmul.msk.f32.gmra.mxu0 %vm278_vm1, %v5728_v20  ;;  %v5808_v0 = vld [vmem:[%s4568_s22 + $0xf2] sm:$0xff] }
 0x292   : > { %4275 = vmatmul.msk.f32.gmra.mxu2 %vm278_vm1, %v4241_v8  ;;  %v4176_v8 = vld [vmem:[%s4568_s22 + $0xf0] sm:$0xff] }
 0x293   : > { %4209 = vmatmul.msk.f32.gmra.mxu1 %vm278_vm1, %v4175_v63  ;;  %4341 = vmatmul.msk.f32.gmra.mxu3 %vm278_vm1, %v5792_v2  ;;  %v1851_v60 = vadd.f32 %v5280_v36, %v1816_v10 }
 0x295   : > { %v2161_v49 = vpop.f32.mrf.mxu2  ;;  %1883 = vst [vmem:[%s5289_s11 + $0x1d8] sm:$0xff] %v1851_v60 }
 0x296   : > { %v2373_v47 = vpop.f32.mrf.mxu3  ;;  %v2526_v53 = vpop.f32.mrf.mxu0 }
 0x297   : > { %v5802_v46 = vadd.f32 %v2373_v47, %v2161_v49  ;;  %v2622_v21 = vadd.f32 %v2526_v53, %v5297_v54  ;;  %v4243_v47 = vld [vmem:[%s4568_s22 + $0xf9] sm:$0xff] }
 0x298   : > { %v2805_v20 = vpop.f32.mrf.mxu1 }
 0x299   : > { %6187 = vst [vmem:[#allocation3_spill] sm:$0xff] %v5802_v46  ;;  %4144 = vmatmul.msk.f32.gmra.mxu0 %vm278_vm1, %v5744_v24  ;;  %v2901_v63 = vadd.f32 %v2805_v20, %v2622_v21  ;;  %v4177_v24 = vld [vmem:[%s4568_s22 + $0xf8] sm:$0xff] }
 0x29a   : > { %4276 = vmatmul.msk.f32.gmra.mxu2 %vm278_vm1, %v4242_v35 }
 0x29b   : > { %4210 = vmatmul.msk.f32.gmra.mxu1 %vm278_vm1, %v4176_v8  ;;  %4342 = vmatmul.msk.f32.gmra.mxu3 %vm278_vm1, %v5808_v0 }
 0x29d   : > { %v3083_v10 = vpop.f32.mrf.mxu2 }
 0x29e   : > { %v3179_v54 = vadd.f32 %v3083_v10, %v2901_v63  ;;  %v3361_v60 = vpop.f32.mrf.mxu3  ;;  %v2529_v49 = vpop.f32.mrf.mxu0  ;;  %v4244_v10 = vld [vmem:[%s4568_s22 + $0x101] sm:$0xff] }
 0x29f   : > { %v2623_v53 = vadd.f32 %v2529_v49, %v5310_v61 }
 0x2a0   : > { %v3457_v46 = vadd.f32 %v3361_v60, %v3179_v54  ;;  %v2808_v11 = vpop.f32.mrf.mxu1  ;;  %v5833_v54 = vld [vmem:[%s4568_s22 + $0x102] sm:$0xff]  ;;  %v5838_v60 = vld [vmem:[%s6062_s2] ss:$0 sm:$0xff] }
 0x2a1   : > { %4145 = vmatmul.msk.f32.gmra.mxu0 %vm278_vm1, %v5760_v43  ;;  %v2902_v61 = vadd.f32 %v2808_v11, %v2623_v53 }
 0x2a2   : > { %v3489_v35 = vadd.f32 %v5280_v36, %v3457_v46  ;;  %4277 = vmatmul.msk.f32.gmra.mxu2 %vm278_vm1, %v4243_v47 }
 0x2a3   : > { %4211 = vmatmul.msk.f32.gmra.mxu1 %vm278_vm1, %v4177_v24  ;;  %4343 = vmatmul.msk.f32.gmra.mxu3 %vm278_vm1, %v5820_v32 }
 0x2a4   : > { %4358 = vst [vmem:[%s5289_s11 + $0x20] sm:$0xff] %v3489_v35  ;;  %v4245_v35 = vld [vmem:[%s4568_s22 + $0x109] sm:$0xff] }
 0x2a5   : > { %v3086_v21 = vpop.f32.mrf.mxu2 }
 0x2a6   : > { %v3180_v20 = vadd.f32 %v3086_v21, %v2902_v61  ;;  %v3364_v8 = vpop.f32.mrf.mxu3  ;;  %v2532_v63 = vpop.f32.mrf.mxu0 }
 0x2a7   : > { %v2624_v36 = vadd.f32 %v2532_v63, %v5323_v19 }
 0x2a8   : > { %v3458_v46 = vadd.f32 %v3364_v8, %v3180_v20  ;;  %v2811_v43 = vpop.f32.mrf.mxu1  ;;  %v5852_v20 = vld [vmem:[%s4568_s22 + $0x10a] sm:$0xff] }
 0x2a9   : > { %4146 = vmatmul.msk.f32.gmra.mxu0 %vm278_vm1, %v5776_v9  ;;  %v2903_v19 = vadd.f32 %v2811_v43, %v2624_v36 }
 0x2aa   : > { %v3490_v11 = vadd.f32 %v5838_v60, %v3458_v46  ;;  %4278 = vmatmul.msk.f32.gmra.mxu2 %vm278_vm1, %v4244_v10  ;;  %v4246_v46 = vld [vmem:[%s4568_s22 + $0x119] sm:$0xff] }
 0x2ab   : > { %4212 = vmatmul.msk.f32.gmra.mxu1 %vm278_vm1, %v5366_v38  ;;  %4344 = vmatmul.msk.f32.gmra.mxu3 %vm278_vm1, %v5833_v54 }
 0x2ac   : > { %4359 = vst [vmem:[%s5289_s11 + $0x28] sm:$0xff] %v3490_v11 }
 0x2ad   : > { %v3089_v49 = vpop.f32.mrf.mxu2 }
 0x2ae   : > { %v3181_v47 = vadd.f32 %v3089_v49, %v2903_v19  ;;  %v3367_v53 = vpop.f32.mrf.mxu3  ;;  %v2535_v24 = vpop.f32.mrf.mxu0  ;;  %v5866_v19 = vld [vmem:[%s4568_s22 + $0x11a] sm:$0xff] }
 0x2af   : > { %v2625_v61 = vadd.f32 %v2535_v24, %v5336_v37 }
 0x2b0   : > { %v3459_v9 = vadd.f32 %v3367_v53, %v3181_v47  ;;  %v2814_v21 = vpop.f32.mrf.mxu1 }
 0x2b1   : > { %4147 = vmatmul.msk.f32.gmra.mxu0 %vm278_vm1, %v5792_v2  ;;  %v2904_v37 = vadd.f32 %v2814_v21, %v2625_v61  ;;  %v4313_v21 = vld [vmem:[%s4568_s22 + $0x122] sm:$0xff] }
 0x2b2   : > { %v3491_v38 = vadd.f32 %v5838_v60, %v3459_v9  ;;  %4279 = vmatmul.msk.f32.gmra.mxu2 %vm278_vm1, %v4245_v35  ;;  %v4247_v35 = vld [vmem:[%s4568_s22 + $0x121] sm:$0xff] }
 0x2b3   : > { %4213 = vmatmul.msk.f32.gmra.mxu1 %vm278_vm1, %v5382_v29  ;;  %4345 = vmatmul.msk.f32.gmra.mxu3 %vm278_vm1, %v5852_v20 }
 0x2b4   : > { %4360 = vst [vmem:[%s5289_s11 + $0x30] sm:$0xff] %v3491_v38 }
 0x2b5   : > { %v3092_v8 = vpop.f32.mrf.mxu2 }
 0x2b6   : > { %v3182_v63 = vadd.f32 %v3092_v8, %v2904_v37  ;;  %v3370_v10 = vpop.f32.mrf.mxu3  ;;  %v2538_v36 = vpop.f32.mrf.mxu0 }
 0x2b7   : > { %v2626_v43 = vadd.f32 %v2538_v36, %v5349_v30 }
 0x2b8   : > { %v3460_v2 = vadd.f32 %v3370_v10, %v3182_v63  ;;  %v2817_v11 = vpop.f32.mrf.mxu1  ;;  %v4248_v10 = vld [vmem:[%s4568_s22 + $0x129] sm:$0xff] }
 0x2b9   : > { %4148 = vmatmul.msk.f32.gmra.mxu0 %vm278_vm1, %v5808_v0  ;;  %v2905_v30 = vadd.f32 %v2817_v11, %v2626_v43  ;;  %v4314_v43 = vld [vmem:[%s4568_s22 + $0x12a] sm:$0xff] }
 0x2ba   : > { %v3492_v29 = vadd.f32 %v5838_v60, %v3460_v2  ;;  %4280 = vmatmul.msk.f32.gmra.mxu2 %vm278_vm1, %v4246_v46 }
 0x2bb   : > { %4214 = vmatmul.msk.f32.gmra.mxu1 %vm278_vm1, %v5398_v31  ;;  %4346 = vmatmul.msk.f32.gmra.mxu3 %vm278_vm1, %v5866_v19 }
 0x2bc   : > { %4361 = vst [vmem:[%s5289_s11 + $0x38] sm:$0xff] %v3492_v29 }
 0x2bd   : > { %v3095_v49 = vpop.f32.mrf.mxu2 }
 0x2be   : > { %v3183_v47 = vadd.f32 %v3095_v49, %v2905_v30  ;;  %v3373_v53 = vpop.f32.mrf.mxu3  ;;  %v2541_v24 = vpop.f32.mrf.mxu0  ;;  %v4249_v49 = vld [vmem:[%s4568_s22 + $0x131] sm:$0xff] }
 0x2bf   : > { %v2627_v61 = vadd.f32 %v2541_v24, %v5362_v22 }
 0x2c0   : > { %v3461_v0 = vadd.f32 %v3373_v53, %v3183_v47  ;;  %v2820_v9 = vpop.f32.mrf.mxu1 }
 0x2c1   : > { %4149 = vmatmul.msk.f32.gmra.mxu0 %vm278_vm1, %v5820_v32  ;;  %v2906_v38 = vadd.f32 %v2820_v9, %v2627_v61 }
 0x2c2   : > { %v3493_v31 = vadd.f32 %v5838_v60, %v3461_v0  ;;  %4281 = vmatmul.msk.f32.gmra.mxu2 %vm278_vm1, %v4247_v35 }
 0x2c3   : > { %4215 = vmatmul.msk.f32.gmra.mxu1 %vm278_vm1, %v5414_v48  ;;  %4347 = vmatmul.msk.f32.gmra.mxu3 %vm278_vm1, %v4313_v21 }
 0x2c4   : > { %4362 = vst [vmem:[%s5289_s11 + $0x60] sm:$0xff] %v3493_v31 }
 0x2c5   : > { %v3098_v22 = vpop.f32.mrf.mxu2 }
 0x2c6   : > { %v3184_v37 = vadd.f32 %v3098_v22, %v2906_v38  ;;  %v3376_v8 = vpop.f32.mrf.mxu3  ;;  %v2544_v63 = vpop.f32.mrf.mxu0 }
 0x2c7   : > { %v2628_v36 = vadd.f32 %v2544_v63, %v5378_v52 }
 0x2c8   : > { %v3462_v46 = vadd.f32 %v3376_v8, %v3184_v37  ;;  %v2823_v32 = vpop.f32.mrf.mxu1 }
 0x2c9   : > { %4150 = vmatmul.msk.f32.gmra.mxu0 %vm278_vm1, %v5833_v54  ;;  %v2907_v48 = vadd.f32 %v2823_v32, %v2628_v36  ;;  %v4315_v54 = vld [vmem:[%s4568_s22 + $0x132] sm:$0xff] }
 0x2ca   : > { %v3494_v2 = vadd.f32 %v5838_v60, %v3462_v46  ;;  %4282 = vmatmul.msk.f32.gmra.mxu2 %vm278_vm1, %v4248_v10 }
 0x2cb   : > { %4216 = vmatmul.msk.f32.gmra.mxu1 %vm278_vm1, %v5430_v17  ;;  %4348 = vmatmul.msk.f32.gmra.mxu3 %vm278_vm1, %v4314_v43 }
 0x2cc   : > { %4363 = vst [vmem:[%s5289_s11 + $0x68] sm:$0xff] %v3494_v2 }
 0x2cd   : > { %v3101_v52 = vpop.f32.mrf.mxu2 }
 0x2ce   : > { %v3185_v11 = vadd.f32 %v3101_v52, %v2907_v48  ;;  %v3379_v29 = vpop.f32.mrf.mxu3  ;;  %v2547_v30 = vpop.f32.mrf.mxu0 }
 0x2cf   : > { %v2629_v47 = vadd.f32 %v2547_v30, %v5394_v4 }
 0x2d0   : > { %v3463_v53 = vadd.f32 %v3379_v29, %v3185_v11  ;;  %v2826_v24 = vpop.f32.mrf.mxu1 }
 0x2d1   : > { %4151 = vmatmul.msk.f32.gmra.mxu0 %vm278_vm1, %v5852_v20  ;;  %v2908_v17 = vadd.f32 %v2826_v24, %v2629_v47  ;;  %v4254_v24 = vld [vmem:[%s4568_s22 + $0x169] sm:$0xff] }
 0x2d2   : > { %v3495_v35 = vadd.f32 %v5838_v60, %v3463_v53  ;;  %4283 = vmatmul.msk.f32.gmra.mxu2 %vm278_vm1, %v4249_v49  ;;  %v4122_v53 = vld [vmem:[%s4568_s22 + $0x142] sm:$0xff] }
 0x2d3   : > { %4217 = vmatmul.msk.f32.gmra.mxu1 %vm278_vm1, %v5446_v23  ;;  %4349 = vmatmul.msk.f32.gmra.mxu3 %vm278_vm1, %v4315_v54 }
 0x2d4   : > { %4364 = vst [vmem:[%s5289_s11 + $0x70] sm:$0xff] %v3495_v35 }
 0x2d5   : > { %v3104_v61 = vpop.f32.mrf.mxu2 }
 0x2d6   : > { %v3186_v4 = vadd.f32 %v3104_v61, %v2908_v17  ;;  %v3382_v0 = vpop.f32.mrf.mxu3  ;;  %v2550_v9 = vpop.f32.mrf.mxu0  ;;  %v4188_v17 = vld [vmem:[%s4568_s22 + $0x168] sm:$0xff] }
 0x2d7   : > { %v2630_v31 = vadd.f32 %v2550_v9, %v5410_v45 }
 0x2d8   : > { %v3464_v38 = vadd.f32 %v3382_v0, %v3186_v4  ;;  %v2829_v22 = vpop.f32.mrf.mxu1 }
 0x2d9   : > { %4152 = vmatmul.msk.f32.gmra.mxu0 %vm278_vm1, %v5866_v19  ;;  %v2909_v23 = vadd.f32 %v2829_v22, %v2630_v31  ;;  %v4123_v31 = vld [vmem:[%s4568_s22 + $0x14a] sm:$0xff] }
 0x2da   : > { %v3496_v20 = vadd.f32 %v5838_v60, %v3464_v38  ;;  %4284 = vmatmul.msk.f32.gmra.mxu2 %vm278_vm1, %v5461_v33  ;;  %v4255_v38 = vld [vmem:[%s4568_s22 + $0x171] sm:$0xff] }
 0x2db   : > { %4218 = vmatmul.msk.f32.gmra.mxu1 %vm278_vm1, %v5465_v12  ;;  %4350 = vmatmul.msk.f32.gmra.mxu3 %vm278_vm1, %v5468_v5 }
 0x2dc   : > { %4365 = vst [vmem:[%s5289_s11 + $0x78] sm:$0xff] %v3496_v20 }
 0x2dd   : > { %v3107_v45 = vpop.f32.mrf.mxu2 }
 0x2de   : > { %v3187_v37 = vadd.f32 %v3107_v45, %v2909_v23  ;;  %v3385_v8 = vpop.f32.mrf.mxu3  ;;  %v2553_v63 = vpop.f32.mrf.mxu0  ;;  %v4189_v45 = vld [vmem:[%s4568_s22 + $0x170] sm:$0xff] }
 0x2df   : > { %v2631_v10 = vadd.f32 %v2553_v63, %v5426_v14 }
 0x2e0   : > { %v3465_v36 = vadd.f32 %v3385_v8, %v3187_v37  ;;  %v2832_v19 = vpop.f32.mrf.mxu1  ;;  %v4321_v37 = vld [vmem:[%s4568_s22 + $0x172] sm:$0xff] }
 0x2e1   : > { %4153 = vmatmul.msk.f32.gmra.mxu0 %vm278_vm1, %v4313_v21  ;;  %v2910_v33 = vadd.f32 %v2832_v19, %v2631_v10 }
 0x2e2   : > { %v3497_v46 = vadd.f32 %v5838_v60, %v3465_v36  ;;  %4285 = vmatmul.msk.f32.gmra.mxu2 %vm278_vm1, %v5483_v39 }
 0x2e3   : > { %4219 = vmatmul.msk.f32.gmra.mxu1 %vm278_vm1, %v5487_v58  ;;  %4351 = vmatmul.msk.f32.gmra.mxu3 %vm278_vm1, %v5490_v42 }
 0x2e4   : > { %4366 = vst [vmem:[%s5289_s11 + $0xa0] sm:$0xff] %v3497_v46  ;;  %v4124_v46 = vld [vmem:[%s4568_s22 + $0x152] sm:$0xff] }
 0x2e5   : > { %v3110_v12 = vpop.f32.mrf.mxu2 }
 0x2e6   : > { %v3188_v14 = vadd.f32 %v3110_v12, %v2910_v33  ;;  %v3388_v5 = vpop.f32.mrf.mxu3  ;;  %v2556_v32 = vpop.f32.mrf.mxu0  ;;  %v4256_v33 = vld [vmem:[%s4568_s22 + $0x179] sm:$0xff] }
 0x2e7   : > { %v2632_v2 = vadd.f32 %v2556_v32, %v5442_v50  ;;  %v4190_v32 = vld [vmem:[%s4568_s22 + $0x178] sm:$0xff] }
 0x2e8   : > { %v3466_v48 = vadd.f32 %v3388_v5, %v3188_v14  ;;  %v2835_v21 = vpop.f32.mrf.mxu1 }
 0x2e9   : > { %4154 = vmatmul.msk.f32.gmra.mxu0 %vm278_vm1, %v4314_v43  ;;  %v2911_v39 = vadd.f32 %v2835_v21, %v2632_v2  ;;  %v4322_v2 = vld [vmem:[%s4568_s22 + $0x17a] sm:$0xff] }
 0x2ea   : > { %v3498_v52 = vadd.f32 %v5838_v60, %v3466_v48  ;;  %4286 = vmatmul.msk.f32.gmra.mxu2 %vm278_vm1, %v5505_v7 }
 0x2eb   : > { %4220 = vmatmul.msk.f32.gmra.mxu1 %vm278_vm1, %v5509_v25  ;;  %4352 = vmatmul.msk.f32.gmra.mxu3 %vm278_vm1, %v5512_v1 }
 0x2ec   : > { %4367 = vst [vmem:[%s5289_s11 + $0xa8] sm:$0xff] %v3498_v52 }
 0x2ed   : > { %v3113_v58 = vpop.f32.mrf.mxu2 }
 0x2ee   : > { %v3189_v50 = vadd.f32 %v3113_v58, %v2911_v39  ;;  %v3391_v42 = vpop.f32.mrf.mxu3  ;;  %v2559_v11 = vpop.f32.mrf.mxu0 }
 0x2ef   : > { %v2633_v43 = vadd.f32 %v2559_v11, %v5458_v56 }
 0x2f0   : > { %v3467_v29 = vadd.f32 %v3391_v42, %v3189_v50  ;;  %v2838_v30 = vpop.f32.mrf.mxu1  ;;  %v4125_v50 = vld [vmem:[%s4568_s22 + $0x15a] sm:$0xff] }
 0x2f1   : > { %4155 = vmatmul.msk.f32.gmra.mxu0 %vm278_vm1, %v4315_v54  ;;  %v2912_v25 = vadd.f32 %v2838_v30, %v2633_v43  ;;  %v4257_v42 = vld [vmem:[%s4568_s22 + $0x181] sm:$0xff] }
 0x2f2   : > { %v3499_v7 = vadd.f32 %v5838_v60, %v3467_v29  ;;  %4287 = vmatmul.msk.f32.gmra.mxu2 %vm278_vm1, %v5527_v55  ;;  %v4191_v30 = vld [vmem:[%s4568_s22 + $0x180] sm:$0xff] }
 0x2f3   : > { %4221 = vmatmul.msk.f32.gmra.mxu1 %vm278_vm1, %v5531_v57  ;;  %4353 = vmatmul.msk.f32.gmra.mxu3 %vm278_vm1, %v5534_v62  ;;  %v4320_v57 = vld [vmem:[%s4568_s22 + $0x16a] sm:$0xff] }
 0x2f4   : > { %4368 = vst [vmem:[%s5289_s11 + $0xb0] sm:$0xff] %v3499_v7  ;;  %v4323_v7 = vld [vmem:[%s4568_s22 + $0x182] sm:$0xff] }
 0x2f5   : > { %v3116_v56 = vpop.f32.mrf.mxu2 }
 0x2f6   : > { %v3190_v1 = vadd.f32 %v3116_v56, %v2912_v25  ;;  %v3394_v49 = vpop.f32.mrf.mxu3  ;;  %v2562_v47 = vpop.f32.mrf.mxu0 }
 0x2f7   : > { %v2634_v54 = vadd.f32 %v2562_v47, %v5480_v44 }
 0x2f8   : > { %v3468_v35 = vadd.f32 %v3394_v49, %v3190_v1  ;;  %v2841_v55 = vpop.f32.mrf.mxu1 }
 0x2f9   : > { %4156 = vmatmul.msk.f32.gmra.mxu0 %vm278_vm1, %v4122_v53  ;;  %v2913_v44 = vadd.f32 %v2841_v55, %v2634_v54  ;;  %v6188_v53 = vld [vmem:[#allocation2_spill] sm:$0xff] }
 0x2fa   : > { %v3500_v61 = vadd.f32 %v5838_v60, %v3468_v35  ;;  %4288 = vmatmul.msk.f32.gmra.mxu2 %vm278_vm1, %v4254_v24 }
 0x2fb   : > { %4222 = vmatmul.msk.f32.gmra.mxu1 %vm278_vm1, %v4188_v17  ;;  %4354 = vmatmul.msk.f32.gmra.mxu3 %vm278_vm1, %v4320_v57 }
 0x2fc   : > { %4369 = vst [vmem:[%s5289_s11 + $0xb8] sm:$0xff] %v3500_v61 }
 0x2fd   : > { %v3119_v62 = vpop.f32.mrf.mxu2 }
 0x2fe   : > { %v3191_v4 = vadd.f32 %v3119_v62, %v2913_v44  ;;  %v3397_v0 = vpop.f32.mrf.mxu3  ;;  %v2565_v9 = vpop.f32.mrf.mxu0 }
 0x2ff   : > { %v2635_v22 = vadd.f32 %v2565_v9, %v5502_v6 }
 0x300   : > { %v3469_v20 = vadd.f32 %v3397_v0, %v3191_v4  ;;  %v2844_v23 = vpop.f32.mrf.mxu1  ;;  %v6189_v4 = vld [vmem:[#allocation8_spill] sm:$0xff] }
 0x301   : > { %4157 = vmatmul.msk.f32.gmra.mxu0 %vm278_vm1, %v4123_v31  ;;  %v2914_v6 = vadd.f32 %v2844_v23, %v2635_v22 }
 0x302   : > { %v3501_v8 = vadd.f32 %v5838_v60, %v3469_v20  ;;  %4289 = vmatmul.msk.f32.gmra.mxu2 %vm278_vm1, %v4255_v38 }
 0x303   : > { %4223 = vmatmul.msk.f32.gmra.mxu1 %vm278_vm1, %v4189_v45  ;;  %4355 = vmatmul.msk.f32.gmra.mxu3 %vm278_vm1, %v4321_v37 }
 0x304   : > { %4370 = vst [vmem:[%s5289_s11 + $0xe0] sm:$0xff] %v3501_v8 }
 0x305   : > { %v3122_v63 = vpop.f32.mrf.mxu2 }
 0x306   : > { %v3192_v10 = vadd.f32 %v3122_v63, %v2914_v6  ;;  %v3400_v36 = vpop.f32.mrf.mxu3  ;;  %v2568_v19 = vpop.f32.mrf.mxu0 }
 0x307   : > { %v2636_v12 = vadd.f32 %v2568_v19, %v5524_v51 }
 0x308   : > { %v3470_v14 = vadd.f32 %v3400_v36, %v3192_v10  ;;  %v2847_v5 = vpop.f32.mrf.mxu1 }
 0x309   : > { %4158 = vmatmul.msk.f32.gmra.mxu0 %vm278_vm1, %v4124_v46  ;;  %v2915_v51 = vadd.f32 %v2847_v5, %v2636_v12 }
 0x30a   : > { %v3502_v48 = vadd.f32 %v5838_v60, %v3470_v14  ;;  %4290 = vmatmul.msk.f32.gmra.mxu2 %vm278_vm1, %v4256_v33 }
 0x30b   : > { %4224 = vmatmul.msk.f32.gmra.mxu1 %vm278_vm1, %v4190_v32  ;;  %4356 = vmatmul.msk.f32.gmra.mxu3 %vm278_vm1, %v4322_v2 }
 0x30c   : > { %4371 = vst [vmem:[%s5289_s11 + $0xe8] sm:$0xff] %v3502_v48 }
 0x30d   : > { %v3125_v21 = vpop.f32.mrf.mxu2 }
 0x30e   : > { %v3193_v52 = vadd.f32 %v3125_v21, %v2915_v51  ;;  %v3403_v39 = vpop.f32.mrf.mxu3  ;;  %v2571_v58 = vpop.f32.mrf.mxu0 }
 0x30f   : > { %v2637_v11 = vadd.f32 %v2571_v58, %v5546_v13 }
 0x310   : > { %v3471_v43 = vadd.f32 %v3403_v39, %v3193_v52  ;;  %v2850_v29 = vpop.f32.mrf.mxu1 }
 0x311   : > { %4159 = vmatmul.msk.f32.gmra.mxu0 %vm278_vm1, %v4125_v50  ;;  %v2916_v56 = vadd.f32 %v2850_v29, %v2637_v11 }
 0x312   : > { %v3503_v25 = vadd.f32 %v5838_v60, %v3471_v43  ;;  %4291 = vmatmul.msk.f32.gmra.mxu2 %vm278_vm1, %v4257_v42 }
 0x313   : > { %4225 = vmatmul.msk.f32.gmra.mxu1 %vm278_vm1, %v4191_v30  ;;  %4357 = vmatmul.msk.f32.gmra.mxu3 %vm278_vm1, %v4323_v7 }
 0x314   : > { %4372 = vst [vmem:[%s5289_s11 + $0xf0] sm:$0xff] %v3503_v25 }
 0x315   : > { %v3128_v1 = vpop.f32.mrf.mxu2 }
 0x316   : > { %v3194_v49 = vadd.f32 %v3128_v1, %v2916_v56  ;;  %v3406_v13 = vpop.f32.mrf.mxu3  ;;  %v2574_v47 = vpop.f32.mrf.mxu0 }
 0x317   : > { %v2638_v24 = vadd.f32 %v2574_v47, %v6188_v53 }
 0x318   : > { %v3472_v54 = vadd.f32 %v3406_v13, %v3194_v49  ;;  %v2853_v35 = vpop.f32.mrf.mxu1 }
 0x319   : > { %v2917_v17 = vadd.f32 %v2853_v35, %v2638_v24 }
 0x31a   : > { %v3504_v55 = vadd.f32 %v5838_v60, %v3472_v54 }
 0x31c   : > { %4373 = vst [vmem:[%s5289_s11 + $0xf8] sm:$0xff] %v3504_v55 }
 0x31d   : > { %v3131_v57 = vpop.f32.mrf.mxu2 }
 0x31e   : > { %v3195_v61 = vadd.f32 %v3131_v57, %v2917_v17  ;;  %v3409_v44 = vpop.f32.mrf.mxu3  ;;  %v2577_v62 = vpop.f32.mrf.mxu0 }
 0x31f   : > { %v2639_v0 = vadd.f32 %v2577_v62, %v6189_v4 }
 0x320   : > { %v3473_v9 = vadd.f32 %v3409_v44, %v3195_v61  ;;  %v2856_v31 = vpop.f32.mrf.mxu1 }
 0x321   : > { %v2918_v22 = vadd.f32 %v2856_v31, %v2639_v0 }
 0x322   : > { %v3505_v38 = vadd.f32 %v5838_v60, %v3473_v9 }
 0x324   : > { %4374 = vst [vmem:[%s5289_s11 + $0x120] sm:$0xff] %v3505_v38 }
 0x325   : > { %v3134_v20 = vpop.f32.mrf.mxu2 }
 0x326   : > { %v3196_v23 = vadd.f32 %v3134_v20, %v2918_v22  ;;  %v3412_v45 = vpop.f32.mrf.mxu3  ;;  %v2580_v37 = vpop.f32.mrf.mxu0 }
 0x327   : > { %v2640_v8 = vadd.f32 %v2580_v37, %v5594_v15 }
 0x328   : > { %v3474_v6 = vadd.f32 %v3412_v45, %v3196_v23  ;;  %v2859_v63 = vpop.f32.mrf.mxu1 }
 0x329   : > { %v2919_v36 = vadd.f32 %v2859_v63, %v2640_v8 }
 0x32a   : > { %v3506_v10 = vadd.f32 %v5838_v60, %v3474_v6 }
 0x32c   : > { %4375 = vst [vmem:[%s5289_s11 + $0x128] sm:$0xff] %v3506_v10 }
 0x32d   : > { %v3137_v19 = vpop.f32.mrf.mxu2 }
 0x32e   : > { %v3197_v46 = vadd.f32 %v3137_v19, %v2919_v36  ;;  %v3415_v33 = vpop.f32.mrf.mxu3  ;;  %v2583_v12 = vpop.f32.mrf.mxu0 }
 0x32f   : > { %v2641_v14 = vadd.f32 %v2583_v12, %v5610_v3 }
 0x330   : > { %v3475_v5 = vadd.f32 %v3415_v33, %v3197_v46  ;;  %v2862_v32 = vpop.f32.mrf.mxu1 }
 0x331   : > { %v2920_v48 = vadd.f32 %v2862_v32, %v2641_v14 }
 0x332   : > { %v3507_v2 = vadd.f32 %v5838_v60, %v3475_v5 }
 0x334   : > { %4376 = vst [vmem:[%s5289_s11 + $0x130] sm:$0xff] %v3507_v2 }
 0x335   : > { %v3140_v15 = vpop.f32.mrf.mxu2 }
 0x336   : > { %v3198_v51 = vadd.f32 %v3140_v15, %v2920_v48  ;;  %v3418_v21 = vpop.f32.mrf.mxu3  ;;  %v2586_v52 = vpop.f32.mrf.mxu0 }
 0x337   : > { %v2642_v39 = vadd.f32 %v2586_v52, %v5626_v41 }
 0x338   : > { %v3476_v58 = vadd.f32 %v3418_v21, %v3198_v51  ;;  %v2865_v50 = vpop.f32.mrf.mxu1 }
 0x339   : > { %v2921_v11 = vadd.f32 %v2865_v50, %v2642_v39 }
 0x33a   : > { %v3508_v42 = vadd.f32 %v5838_v60, %v3476_v58 }
 0x33c   : > { %4377 = vst [vmem:[%s5289_s11 + $0x138] sm:$0xff] %v3508_v42 }
 0x33d   : > { %v3143_v3 = vpop.f32.mrf.mxu2 }
 0x33e   : > { %v3199_v43 = vadd.f32 %v3143_v3, %v2921_v11  ;;  %v3421_v29 = vpop.f32.mrf.mxu3  ;;  %v2589_v30 = vpop.f32.mrf.mxu0 }
 0x33f   : > { %v2643_v7 = vadd.f32 %v2589_v30, %v5642_v59 }
 0x340   : > { %v3477_v25 = vadd.f32 %v3421_v29, %v3199_v43  ;;  %v2868_v56 = vpop.f32.mrf.mxu1 }
 0x341   : > { %v2922_v49 = vadd.f32 %v2868_v56, %v2643_v7 }
 0x342   : > { %v3509_v1 = vadd.f32 %v5838_v60, %v3477_v25 }
 0x344   : > { %4378 = vst [vmem:[%s5289_s11 + $0x160] sm:$0xff] %v3509_v1 }
 0x345   : > { %v3146_v41 = vpop.f32.mrf.mxu2 }
 0x346   : > { %v3200_v13 = vadd.f32 %v3146_v41, %v2922_v49  ;;  %v3424_v47 = vpop.f32.mrf.mxu3  ;;  %v2592_v53 = vpop.f32.mrf.mxu0 }
 0x347   : > { %v2644_v24 = vadd.f32 %v2592_v53, %v5658_v28 }
 0x348   : > { %v3478_v54 = vadd.f32 %v3424_v47, %v3200_v13  ;;  %v2871_v35 = vpop.f32.mrf.mxu1 }
 0x349   : > { %v2923_v17 = vadd.f32 %v2871_v35, %v2644_v24 }
 0x34a   : > { %v3510_v55 = vadd.f32 %v5838_v60, %v3478_v54  ;;  %v6190_v54 = vld [vmem:[#allocation4_spill] sm:$0xff] }
 0x34c   : > { %4379 = vst [vmem:[%s5289_s11 + $0x168] sm:$0xff] %v3510_v55 }
 0x34d   : > { %v3149_v59 = vpop.f32.mrf.mxu2 }
 0x34e   : > { %v3201_v57 = vadd.f32 %v3149_v59, %v2923_v17  ;;  %v3427_v61 = vpop.f32.mrf.mxu3  ;;  %v2595_v44 = vpop.f32.mrf.mxu0 }
 0x34f   : > { %v2645_v62 = vadd.f32 %v2595_v44, %v5674_v18 }
 0x350   : > { %v3479_v4 = vadd.f32 %v3427_v61, %v3201_v57  ;;  %v2874_v0 = vpop.f32.mrf.mxu1 }
 0x351   : > { %v2924_v31 = vadd.f32 %v2874_v0, %v2645_v62 }
 0x352   : > { %v3511_v9 = vadd.f32 %v5838_v60, %v3479_v4  ;;  %v6191_v4 = vld [vmem:[#allocation11_spill] sm:$0xff] }
 0x354   : > { %4380 = vst [vmem:[%s5289_s11 + $0x170] sm:$0xff] %v3511_v9 }
 0x355   : > { %v3152_v28 = vpop.f32.mrf.mxu2 }
 0x356   : > { %v3202_v38 = vadd.f32 %v3152_v28, %v2924_v31  ;;  %v3430_v22 = vpop.f32.mrf.mxu3  ;;  %v2598_v20 = vpop.f32.mrf.mxu0 }
 0x357   : > { %v2646_v23 = vadd.f32 %v2598_v20, %v5690_v16 }
 0x358   : > { %v3480_v45 = vadd.f32 %v3430_v22, %v3202_v38  ;;  %v2877_v37 = vpop.f32.mrf.mxu1 }
 0x359   : > { %v2925_v6 = vadd.f32 %v2877_v37, %v2646_v23  ;;  %v6192_v37 = vld [vmem:[#allocation3_spill] sm:$0xff] }
 0x35a   : > { %v3512_v8 = vadd.f32 %v5838_v60, %v3480_v45 }
 0x35c   : > { %4381 = vst [vmem:[%s5289_s11 + $0x178] sm:$0xff] %v3512_v8 }
 0x35d   : > { %v3155_v18 = vpop.f32.mrf.mxu2 }
 0x35e   : > { %v3203_v63 = vadd.f32 %v3155_v18, %v2925_v6  ;;  %v3433_v10 = vpop.f32.mrf.mxu3  ;;  %v2601_v36 = vpop.f32.mrf.mxu0 }
 0x35f   : > { %v2647_v19 = vadd.f32 %v2601_v36, %v5706_v34 }
 0x360   : > { %v3481_v46 = vadd.f32 %v3433_v10, %v3203_v63  ;;  %v2880_v33 = vpop.f32.mrf.mxu1 }
 0x361   : > { %v2926_v14 = vadd.f32 %v2880_v33, %v2647_v19 }
 0x362   : > { %v3513_v12 = vadd.f32 %v5838_v60, %v3481_v46 }
 0x364   : > { %4382 = vst [vmem:[%s5289_s11 + $0x1a0] sm:$0xff] %v3513_v12 }
 0x365   : > { %v3158_v16 = vpop.f32.mrf.mxu2 }
 0x366   : > { %v3204_v5 = vadd.f32 %v3158_v16, %v2926_v14  ;;  %v3436_v32 = vpop.f32.mrf.mxu3  ;;  %v2604_v2 = vpop.f32.mrf.mxu0 }
 0x367   : > { %v2648_v48 = vadd.f32 %v2604_v2, %v5722_v26 }
 0x368   : > { %v3482_v15 = vadd.f32 %v3436_v32, %v3204_v5  ;;  %v2883_v51 = vpop.f32.mrf.mxu1 }
 0x369   : > { %v2927_v52 = vadd.f32 %v2883_v51, %v2648_v48 }
 0x36a   : > { %v3514_v21 = vadd.f32 %v5838_v60, %v3482_v15 }
 0x36c   : > { %4383 = vst [vmem:[%s5289_s11 + $0x1a8] sm:$0xff] %v3514_v21 }
 0x36d   : > { %v3161_v34 = vpop.f32.mrf.mxu2 }
 0x36e   : > { %v3205_v39 = vadd.f32 %v3161_v34, %v2927_v52  ;;  %v3439_v58 = vpop.f32.mrf.mxu3  ;;  %v2607_v50 = vpop.f32.mrf.mxu0 }
 0x36f   : > { %v2649_v42 = vadd.f32 %v2607_v50, %v5738_v27 }
 0x370   : > { %v3483_v11 = vadd.f32 %v3439_v58, %v3205_v39  ;;  %v2886_v3 = vpop.f32.mrf.mxu1 }
 0x371   : > { %v2928_v29 = vadd.f32 %v2886_v3, %v2649_v42 }
 0x372   : > { %v3515_v43 = vadd.f32 %v5838_v60, %v3483_v11 }
 0x374   : > { %4384 = vst [vmem:[%s5289_s11 + $0x1b0] sm:$0xff] %v3515_v43 }
 0x375   : > { %v3164_v26 = vpop.f32.mrf.mxu2 }
 0x376   : > { %v3206_v30 = vadd.f32 %v3164_v26, %v2928_v29  ;;  %v3442_v7 = vpop.f32.mrf.mxu3  ;;  %v2610_v25 = vpop.f32.mrf.mxu0 }
 0x377   : > { %v2650_v56 = vadd.f32 %v2610_v25, %v5754_v40 }
 0x378   : > { %v3484_v1 = vadd.f32 %v3442_v7, %v3206_v30  ;;  %v2889_v49 = vpop.f32.mrf.mxu1 }
 0x379   : > { %v2929_v13 = vadd.f32 %v2889_v49, %v2650_v56 }
 0x37a   : > { %v3516_v41 = vadd.f32 %v5838_v60, %v3484_v1 }
 0x37c   : > { %4385 = vst [vmem:[%s5289_s11 + $0x1b8] sm:$0xff] %v3516_v41 }
 0x37d   : > { %v3167_v27 = vpop.f32.mrf.mxu2 }
 0x37e   : > { %v3207_v47 = vadd.f32 %v3167_v27, %v2929_v13  ;;  %v3445_v53 = vpop.f32.mrf.mxu3  ;;  %v2613_v24 = vpop.f32.mrf.mxu0 }
 0x37f   : > { %v2651_v35 = vadd.f32 %v2613_v24, %v6190_v54 }
 0x380   : > { %v3485_v55 = vadd.f32 %v3445_v53, %v3207_v47  ;;  %v2892_v17 = vpop.f32.mrf.mxu1 }
 0x381   : > { %v2930_v57 = vadd.f32 %v2892_v17, %v2651_v35 }
 0x382   : > { %v3517_v59 = vadd.f32 %v5838_v60, %v3485_v55 }
 0x384   : > { %4386 = vst [vmem:[%s5289_s11 + $0x1e0] sm:$0xff] %v3517_v59 }
 0x385   : > { %v3170_v40 = vpop.f32.mrf.mxu2 }
 0x386   : > { %v3208_v61 = vadd.f32 %v3170_v40, %v2930_v57  ;;  %v3448_v44 = vpop.f32.mrf.mxu3  ;;  %v2616_v62 = vpop.f32.mrf.mxu0 }
 0x387   : > { %v2652_v0 = vadd.f32 %v2616_v62, %v6191_v4 }
 0x388   : > { %v3486_v9 = vadd.f32 %v3448_v44, %v3208_v61  ;;  %v2895_v31 = vpop.f32.mrf.mxu1 }
 0x389   : > { %v2931_v38 = vadd.f32 %v2895_v31, %v2652_v0 }
 0x38a   : > { %v3518_v28 = vadd.f32 %v5838_v60, %v3486_v9 }
 0x38c   : > { %4387 = vst [vmem:[%s5289_s11 + $0x1e8] sm:$0xff] %v3518_v28 }
 0x38d   : > { %v3173_v22 = vpop.f32.mrf.mxu2 }
 0x38e   : > { %v3209_v20 = vadd.f32 %v3173_v22, %v2931_v38  ;;  %v3451_v23 = vpop.f32.mrf.mxu3  ;;  %v2619_v45 = vpop.f32.mrf.mxu0 }
 0x38f   : > { %v2653_v8 = vadd.f32 %v2619_v45, %v6192_v37 }
 0x390   : > { %v3487_v6 = vadd.f32 %v3451_v23, %v3209_v20  ;;  %v2898_v18 = vpop.f32.mrf.mxu1 }
 0x391   : > { %v2932_v10 = vadd.f32 %v2898_v18, %v2653_v8 }
 0x392   : > { %v3519_v63 = vadd.f32 %v5838_v60, %v3487_v6 }
 0x394   : > { %4388 = vst [vmem:[%s5289_s11 + $0x1f0] sm:$0xff] %v3519_v63 }
 0x395   : > { %v3176_v36 = vpop.f32.mrf.mxu2 }
 0x396   : > { %v3210_v19 = vadd.f32 %v3176_v36, %v2932_v10  ;;  %v3454_v46 = vpop.f32.mrf.mxu3 }
 0x398   : > { %v3488_v33 = vadd.f32 %v3454_v46, %v3210_v19 }
 0x39a   : > { %v3520_v12 = vadd.f32 %v5838_v60, %v3488_v33 }
 0x39c   : > { %4389 = vst [vmem:[%s5289_s11 + $0x1f8] sm:$0xff] %v3520_v12 }
 0x39d PF: > { %s13_s16 = sadd.s32 1, %s4474_s16   ;;  %s6193_s12 = smov %s4466_s14 }
 0x39e   : > { %p10_p8 = scmp.ge.s32.totalorder %s13_s16, 6   ;;  %s6194_s13 = smov %s4470_s15 }
 0x39f   : > { %s6195_s14 = smov %s6198_s17  ;;  %s6196_s15 = smov %s6202_s18 }
 0x3a0   :  { %12 = sbr.rel (!%p10_p8) target bundleno = 3 (0x3), region = 76 }

</bundles_post_ra>
